<compile_context>
chip_gen: v7x
topology: tpu7x:2x2x1
jax: 0.10.0
libtpu: 0.0.40
codegen_flags: <defaults>
</compile_context>

<pallas_src>
import functools

import jax
import jax.numpy as jnp
from jax.experimental import pallas as pl
from jax.experimental.pallas import tpu as pltpu


# ----------------------------- Pallas kernels --------------------------------

def _conv1_kernel(p_ref, w_ref, b_ref, o_ref, *, n_win, mt):
    """Fused conv-as-matmul + max-pool + bias + ReLU (lane-dense pixels).

    p_ref: (K, n_win*mt)  im2col patches, pool windows concatenated along lanes
    w_ref: (Cout, K)      reshaped conv weight
    b_ref: (Cout, 1)      bias (broadcast over lanes)
    o_ref: (Cout, mt)     pooled, activated output; lanes = N*Hp*Wp (padded)
    """
    # One MXU push for all pool windows, then VPU maxima over 128-aligned
    # lane slices (instead of n_win serialized dots through the MRF).
    acc = jnp.dot(w_ref[...], p_ref[...], preferred_element_type=jnp.float32)
    m = acc[:, 0:mt]
    for win in range(1, n_win):
        m = jnp.maximum(m, acc[:, win * mt:(win + 1) * mt])
    o_ref[...] = jnp.maximum(m + b_ref[...], 0.0).astype(o_ref.dtype)


def _conv2_mlp_kernel(p_ref, w_ref, b_ref, w1_ref, b1_ref, w2_ref, b2_ref,
                      o_ref, mbuf, *, n_win, mt, nb, hw, cout):
    """Fused conv2 + bias + ReLU + adaptive max-pool + flatten + linear_1 +
    linear_2 (dropouts are eval-mode identity).

    p_ref : (n_win*mt, K)  transposed im2col patches; rows ordered (pixel, n)
    w_ref : (K, Cout)      conv2 weight, transposed
    b_ref : (1, Cout)      conv2 bias (broadcast over rows)
    w1_ref: (hw*Cout, H1)  linear_1 weight, rows permuted to (pixel, channel)
    b1_ref: (1, H1)
    w2_ref: (H1, Nout)     linear_2 weight, transposed
    b2_ref: (1, Nout)
    o_ref : (nb, Nout)     logits
    mbuf  : VMEM scratch (mt, Cout) holding the pooled activation
    """
    # Single MXU push over the concatenated pool windows, then row-sliced maxes
    # (slices are multiples of mt, a multiple of 8 -> sublane-aligned).
    acc = jnp.dot(p_ref[...], w_ref[...], preferred_element_type=jnp.float32)
    m = acc[0:mt, :]
    for win in range(1, n_win):
        m = jnp.maximum(m, acc[win * mt:(win + 1) * mt, :])
    mbuf[...] = jnp.maximum(m + b_ref[...], 0.0)          # rows = (pixel, sample)

    # linear_1: the flatten contraction spans both tile axes of mbuf, so it is
    # accumulated as one small (nb, Cout) x (Cout, H1) matmul per pooled pixel.
    # All operands are plain static ref slices -- no in-kernel relayout.
    h = jnp.zeros((nb, w1_ref.shape[1]), jnp.float32)
    for p in range(hw):
        h = h + jnp.dot(mbuf[p * nb:(p + 1) * nb, :],
                        w1_ref[p * cout:(p + 1) * cout, :],
                        preferred_element_type=jnp.float32)
    h = h + b1_ref[...]
    o = jnp.dot(h, w2_ref[...], preferred_element_type=jnp.float32) + b2_ref[...]
    o_ref[...] = o.astype(o_ref.dtype)


# ------------------------- layout glue (small XLA ops) ------------------------

def conv_relu_pool(x, w, b, *, stride, pad, pool):
    """Conv2d + bias + ReLU + MaxPool2d(pool, pool), one Pallas kernel.

    x: (Cin, N, H, W) channel-major  ->  (Cout, N, Hp, Wp) channel-major.
    """
    Cout, Cin, kh, kw = w.shape
    C, N, H, W = x.shape
    assert C == Cin
    Ho = (H + 2 * pad - kh) // stride + 1
    Wo = (W + 2 * pad - kw) // stride + 1
    assert Ho % pool == 0 and Wo % pool == 0
    Hp, Wp = Ho // pool, Wo // pool
    K = Cin * kh * kw
    M = N * Hp * Wp
    Mt = pl.cdiv(M, 128) * 128                     # lane-dense, unmasked stores
    step = stride * pool
    xp = jnp.pad(x, ((0, 0), (0, 0), (pad, pad), (pad, pad)))
    slabs = []
    for di in range(pool):
        for dj in range(pool):
            taps = []
            for i in range(kh):
                for j in range(kw):
                    a0, b0 = stride * di + i, stride * dj + j
                    taps.append(xp[:, :, a0::step, b0::step][:, :, :Hp, :Wp])
            t = jnp.stack(taps, axis=0)            # (kh*kw, C, N, Hp, Wp)
            slab = t.transpose(1, 0, 2, 3, 4).reshape(K, M)
            slabs.append(jnp.pad(slab, ((0, 0), (0, Mt - M))))
    patches = jnp.concatenate(slabs, axis=1)       # (K, n_win*Mt), built padded
    n_win = pool * pool
    out = pl.pallas_call(
        functools.partial(_conv1_kernel, n_win=n_win, mt=Mt),
        out_shape=jax.ShapeDtypeStruct((Cout, Mt), jnp.float32),
        grid=(1,),
        in_specs=[pl.BlockSpec((K, n_win * Mt), lambda i: (0, 0)),
                  pl.BlockSpec((Cout, K), lambda i: (0, 0)),
                  pl.BlockSpec((Cout, 1), lambda i: (0, 0))],
        out_specs=pl.BlockSpec((Cout, Mt), lambda i: (0, 0)),
    )(patches, w.reshape(Cout, K), b.reshape(Cout, 1))
    return out[:, :M].reshape(Cout, N, Hp, Wp)     # stays channel-major


def conv_pool_mlp(x, w, b, lin1_w, lin1_b, lin2_w, lin2_b, *, stride, pad, out_hw):
    """Conv2d + ReLU + AdaptiveMaxPool2d(out_hw) + flatten + linear_1 + linear_2,
    all inside one fused Pallas kernel.  x: (Cin, N, H, W) -> logits (N, Nout).
    """
    Cout, Cin, kh, kw = w.shape
    C, N, H, W = x.shape
    assert C == Cin
    Ho = (H + 2 * pad - kh) // stride + 1
    Wo = (W + 2 * pad - kw) // stride + 1
    out_h, out_w = out_hw
    # AdaptiveMaxPool2d == plain strided max-pool only when evenly divisible.
    assert Ho % out_h == 0 and Wo % out_w == 0, (
        "AdaptiveMaxPool2d implemented only for evenly divisible conv output")
    ph, pw = Ho // out_h, Wo // out_w
    Hp, Wp = out_h, out_w
    K = Cin * kh * kw
    hw = Hp * Wp
    M = hw * N                                     # rows, ordered (pixel, sample)
    Mt = pl.cdiv(M, 8) * 8                         # sublane-pad
    step_h, step_w = stride * ph, stride * pw
    xp = jnp.pad(x, ((0, 0), (0, 0), (pad, pad), (pad, pad)))
    slabs = []
    for di in range(ph):
        for dj in range(pw):
            taps = []
            for i in range(kh):
                for j in range(kw):
                    a0, b0 = stride * di + i, stride * dj + j
                    taps.append(xp[:, :, a0::step_h, b0::step_w][:, :, :Hp, :Wp])
            t = jnp.stack(taps, axis=0)            # (kh*kw, C, N, Hp, Wp)
            # rows = (hp, wp, n), cols = (c, i, j): matches w.reshape(Cout, K)
            slab = t.transpose(3, 4, 2, 1, 0).reshape(M, K)
            slabs.append(jnp.pad(slab, ((0, Mt - M), (0, 0))))
    patches = jnp.concatenate(slabs, axis=0)       # (n_win*Mt, K)
    n_win = ph * pw

    H1, Nout = lin1_w.shape[0], lin2_w.shape[0]
    # linear_1 weight rows re-ordered from PyTorch's (channel, pixel) flatten
    # order to (pixel, channel), so per-pixel ref slices feed the MXU directly.
    w1pc = lin1_w.reshape(H1, Cout, hw).transpose(2, 1, 0).reshape(hw * Cout, H1)

    return pl.pallas_call(
        functools.partial(_conv2_mlp_kernel, n_win=n_win, mt=Mt, nb=N, hw=hw,
                          cout=Cout),
        out_shape=jax.ShapeDtypeStruct((N, Nout), jnp.float32),
        grid=(1,),
        in_specs=[pl.BlockSpec((n_win * Mt, K), lambda i: (0, 0)),
                  pl.BlockSpec((K, Cout), lambda i: (0, 0)),
                  pl.BlockSpec((1, Cout), lambda i: (0, 0)),
                  pl.BlockSpec((hw * Cout, H1), lambda i: (0, 0)),
                  pl.BlockSpec((1, H1), lambda i: (0, 0)),
                  pl.BlockSpec((H1, Nout), lambda i: (0, 0)),
                  pl.BlockSpec((1, Nout), lambda i: (0, 0))],
        out_specs=pl.BlockSpec((N, Nout), lambda i: (0, 0)),
        scratch_shapes=[pltpu.VMEM((Mt, Cout), jnp.float32)],
    )(patches, w.reshape(Cout, K).T, b.reshape(1, Cout),
      w1pc, lin1_b.reshape(1, H1), lin2_w.T, lin2_b.reshape(1, Nout))


# --------------------------------- model --------------------------------------

def init_params(key):
    def uniform(k, shape, fan_in):
        bound = 1.0 / (fan_in ** 0.5)
        return jax.random.uniform(k, shape, jnp.float32, -bound, bound)
    ks = jax.random.split(key, 8)
    return {
        "conv1_w": uniform(ks[0], (16, 1, 5, 5), 1 * 5 * 5),
        "conv1_b": uniform(ks[1], (16,), 1 * 5 * 5),
        "conv2_w": uniform(ks[2], (32, 16, 5, 5), 16 * 5 * 5),
        "conv2_b": uniform(ks[3], (32,), 16 * 5 * 5),
        "lin1_w": uniform(ks[4], (100, 5 * 5 * 32), 5 * 5 * 32),
        "lin1_b": uniform(ks[5], (100,), 5 * 5 * 32),
        "lin2_w": uniform(ks[6], (2, 100), 100),
        "lin2_b": uniform(ks[7], (2,), 100),
    }


def cnn_forward(params, x):
    # Work in (C, N, H, W) between the conv stages (no NCHW round-trips on the
    # overhead-bound path).  For Cin=1 this transpose is essentially free.
    x = jnp.transpose(x, (1, 0, 2, 3))
    # conv2D_1: Conv2d(1,16,5,s=2,p=2) + ReLU + MaxPool2d(2,2) -- one kernel.
    x = conv_relu_pool(x, params["conv1_w"], params["conv1_b"],
                       stride=2, pad=2, pool=2)
    # Dropout(0.5): identity in eval mode.
    # conv2D_2 + AdaptiveMaxPool2d((5,5)) + flatten + Dropout + linear_1 +
    # linear_2: one fused kernel producing the logits directly.
    return conv_pool_mlp(x, params["conv2_w"], params["conv2_b"],
                         params["lin1_w"], params["lin1_b"],
                         params["lin2_w"], params["lin2_b"],
                         stride=2, pad=2, out_hw=(5, 5))


if __name__ == "__main__":
    key = jax.random.PRNGKey(0)
    pkey, xkey = jax.random.split(key)
    params = init_params(pkey)
    # 80x80 -> conv1 40 -> pool 20 -> conv2 10 -> adaptive pool 5x5 -> 800 -> 100 -> 2
    x = jax.random.normal(xkey, (2, 1, 80, 80), jnp.float32)
    out = jax.jit(cnn_forward)(params, x)
    jax.block_until_ready(out)
    assert out.shape == (2, 2), out.shape
    print("KERNEL_OK")
</pallas_src>

<mosaic_0001>
module attributes {stable_mosaic.version = 11 : i64} {
  func.func @_conv1_kernel(%arg0: i32, %arg1: memref<25x3584xf32, #tpu.memory_space<vmem>>, %arg2: memref<16x25xf32, #tpu.memory_space<vmem>>, %arg3: memref<16x1xf32, #tpu.memory_space<vmem>>, %arg4: memref<16x896xf32, #tpu.memory_space<vmem>>) attributes {dimension_semantics = [#tpu.dimension_semantics<arbitrary>], iteration_bounds = array<i64: 1>, scalar_prefetch = 0 : i64, scratch_operands = 0 : i64, tpu.core_type = #tpu.core_type<tc>, window_params = [{pipeline_mode = #tpu.pipeline_mode<synchronous>, transform_indices = @transform_0, window_bounds = array<i64: 25, 3584>}, {pipeline_mode = #tpu.pipeline_mode<synchronous>, transform_indices = @transform_1, window_bounds = array<i64: 16, 25>}, {pipeline_mode = #tpu.pipeline_mode<synchronous>, transform_indices = @transform_2, window_bounds = array<i64: 16, 1>}, {pipeline_mode = #tpu.pipeline_mode<synchronous>, transform_indices = @transform_3, window_bounds = array<i64: 16, 896>}]} {
    %c0 = arith.constant 0 : index
    %c0_0 = arith.constant 0 : index
    %0 = vector.load %arg2[%c0, %c0_0] : memref<16x25xf32, #tpu.memory_space<vmem>>, vector<16x25xf32>
    %c0_1 = arith.constant 0 : index
    %c0_2 = arith.constant 0 : index
    %1 = vector.load %arg1[%c0_1, %c0_2] : memref<25x3584xf32, #tpu.memory_space<vmem>>, vector<25x3584xf32>
    %cst = arith.constant dense<0.000000e+00> : vector<16x3584xf32>
    %2 = tpu.matmul %0, %1, %cst {dimension_numbers = #tpu.dot_dimension_numbers<[1], [0], [0], [1], [0, 0, 1, 1], [], []>} : vector<16x25xf32>, vector<25x3584xf32>, vector<16x3584xf32> -> vector<16x3584xf32>
    %3 = vector.extract_strided_slice %2 {offsets = [0, 0], sizes = [16, 896], strides = [1, 1]} : vector<16x3584xf32> to vector<16x896xf32>
    %4 = vector.extract_strided_slice %2 {offsets = [0, 896], sizes = [16, 896], strides = [1, 1]} : vector<16x3584xf32> to vector<16x896xf32>
    %5 = arith.maximumf %3, %4 : vector<16x896xf32>
    %6 = vector.extract_strided_slice %2 {offsets = [0, 1792], sizes = [16, 896], strides = [1, 1]} : vector<16x3584xf32> to vector<16x896xf32>
    %7 = arith.maximumf %5, %6 : vector<16x896xf32>
    %8 = vector.extract_strided_slice %2 {offsets = [0, 2688], sizes = [16, 896], strides = [1, 1]} : vector<16x3584xf32> to vector<16x896xf32>
    %9 = arith.maximumf %7, %8 : vector<16x896xf32>
    %c0_3 = arith.constant 0 : index
    %c0_4 = arith.constant 0 : index
    %10 = vector.load %arg3[%c0_3, %c0_4] : memref<16x1xf32, #tpu.memory_space<vmem>>, vector<16x1xf32>
    %11 = vector.broadcast %10 : vector<16x1xf32> to vector<16x896xf32>
    %12 = arith.addf %9, %11 : vector<16x896xf32>
    %cst_5 = arith.constant 0.000000e+00 : f32
    %13 = vector.broadcast %cst_5 : f32 to vector<16x896xf32>
    %14 = arith.maximumf %12, %13 : vector<16x896xf32>
    %c0_6 = arith.constant 0 : index
    %c0_7 = arith.constant 0 : index
    %15 = vector.load %arg4[%c0_6, %c0_7] : memref<16x896xf32, #tpu.memory_space<vmem>>, vector<16x896xf32>
    tpu.vector_store %arg4[%c0_6, %c0_7], %14 {strides = array<i32>} : memref<16x896xf32, #tpu.memory_space<vmem>>, vector<16x896xf32>,
    return
  }
  func.func @transform_0(%arg0: i32) -> (i32, i32) {
    %c0_i32 = arith.constant 0 : i32
    %c0_i32_0 = arith.constant 0 : i32
    %c0_i32_1 = arith.constant 0 : i32
    return %c0_i32, %c0_i32_0 : i32, i32
  }
  func.func @transform_1(%arg0: i32) -> (i32, i32) {
    %c0_i32 = arith.constant 0 : i32
    %c0_i32_0 = arith.constant 0 : i32
    %c0_i32_1 = arith.constant 0 : i32
    return %c0_i32, %c0_i32_0 : i32, i32
  }
  func.func @transform_2(%arg0: i32) -> (i32, i32) {
    %c0_i32 = arith.constant 0 : i32
    %c0_i32_0 = arith.constant 0 : i32
    %c0_i32_1 = arith.constant 0 : i32
    return %c0_i32, %c0_i32_0 : i32, i32
  }
  func.func @transform_3(%arg0: i32) -> (i32, i32) {
    %c0_i32 = arith.constant 0 : i32
    %c0_i32_0 = arith.constant 0 : i32
    %c0_i32_1 = arith.constant 0 : i32
    return %c0_i32, %c0_i32_0 : i32, i32
  }
}

module attributes {stable_mosaic.version = 11 : i64} {
  func.func @_conv2_mlp_kernel(%arg0: i32, %arg1: memref<224x400xf32, #tpu.memory_space<vmem>>, %arg2: memref<400x32xf32, #tpu.memory_space<vmem>>, %arg3: memref<1x32xf32, #tpu.memory_space<vmem>>, %arg4: memref<800x100xf32, #tpu.memory_space<vmem>>, %arg5: memref<1x100xf32, #tpu.memory_space<vmem>>, %arg6: memref<100x2xf32, #tpu.memory_space<vmem>>, %arg7: memref<1x2xf32, #tpu.memory_space<vmem>>, %arg8: memref<2x2xf32, #tpu.memory_space<vmem>>, %arg9: memref<56x32xf32, #tpu.memory_space<vmem>>) attributes {dimension_semantics = [#tpu.dimension_semantics<arbitrary>], iteration_bounds = array<i64: 1>, scalar_prefetch = 0 : i64, scratch_operands = 1 : i64, tpu.core_type = #tpu.core_type<tc>, window_params = [{pipeline_mode = #tpu.pipeline_mode<synchronous>, transform_indices = @transform_0, window_bounds = array<i64: 224, 400>}, {pipeline_mode = #tpu.pipeline_mode<synchronous>, transform_indices = @transform_1, window_bounds = array<i64: 400, 32>}, {pipeline_mode = #tpu.pipeline_mode<synchronous>, transform_indices = @transform_2, window_bounds = array<i64: 1, 32>}, {pipeline_mode = #tpu.pipeline_mode<synchronous>, transform_indices = @transform_3, window_bounds = array<i64: 800, 100>}, {pipeline_mode = #tpu.pipeline_mode<synchronous>, transform_indices = @transform_4, window_bounds = array<i64: 1, 100>}, {pipeline_mode = #tpu.pipeline_mode<synchronous>, transform_indices = @transform_5, window_bounds = array<i64: 100, 2>}, {pipeline_mode = #tpu.pipeline_mode<synchronous>, transform_indices = @transform_6, window_bounds = array<i64: 1, 2>}, {pipeline_mode = #tpu.pipeline_mode<synchronous>, transform_indices = @transform_7, window_bounds = array<i64: 2, 2>}]} {
    %c0 = arith.constant 0 : index
    %c0_0 = arith.constant 0 : index
    %0 = vector.load %arg1[%c0, %c0_0] : memref<224x400xf32, #tpu.memory_space<vmem>>, vector<224x400xf32>
    %c0_1 = arith.constant 0 : index
    %c0_2 = arith.constant 0 : index
    %1 = vector.load %arg2[%c0_1, %c0_2] : memref<400x32xf32, #tpu.memory_space<vmem>>, vector<400x32xf32>
    %cst = arith.constant dense<0.000000e+00> : vector<224x32xf32>
    %2 = tpu.matmul %0, %1, %cst {dimension_numbers = #tpu.dot_dimension_numbers<[1], [0], [0], [1], [0, 0, 1, 1], [], []>} : vector<224x400xf32>, vector<400x32xf32>, vector<224x32xf32> -> vector<224x32xf32>
    %3 = vector.extract_strided_slice %2 {offsets = [0, 0], sizes = [56, 32], strides = [1, 1]} : vector<224x32xf32> to vector<56x32xf32>
    %4 = vector.extract_strided_slice %2 {offsets = [56, 0], sizes = [56, 32], strides = [1, 1]} : vector<224x32xf32> to vector<56x32xf32>
    %5 = arith.maximumf %3, %4 : vector<56x32xf32>
    %6 = vector.extract_strided_slice %2 {offsets = [112, 0], sizes = [56, 32], strides = [1, 1]} : vector<224x32xf32> to vector<56x32xf32>
    %7 = arith.maximumf %5, %6 : vector<56x32xf32>
    %8 = vector.extract_strided_slice %2 {offsets = [168, 0], sizes = [56, 32], strides = [1, 1]} : vector<224x32xf32> to vector<56x32xf32>
    %9 = arith.maximumf %7, %8 : vector<56x32xf32>
    %c0_3 = arith.constant 0 : index
    %c0_4 = arith.constant 0 : index
    %10 = vector.load %arg3[%c0_3, %c0_4] : memref<1x32xf32, #tpu.memory_space<vmem>>, vector<1x32xf32>
    %11 = vector.broadcast %10 : vector<1x32xf32> to vector<56x32xf32>
    %12 = arith.addf %9, %11 : vector<56x32xf32>
    %cst_5 = arith.constant 0.000000e+00 : f32
    %13 = vector.broadcast %cst_5 : f32 to vector<56x32xf32>
    %14 = arith.maximumf %12, %13 : vector<56x32xf32>
    %c0_6 = arith.constant 0 : index
    %c0_7 = arith.constant 0 : index
    %15 = vector.load %arg9[%c0_6, %c0_7] : memref<56x32xf32, #tpu.memory_space<vmem>>, vector<56x32xf32>
    tpu.vector_store %arg9[%c0_6, %c0_7], %14 {strides = array<i32>} : memref<56x32xf32, #tpu.memory_space<vmem>>, vector<56x32xf32>,
    %cst_8 = arith.constant 0.000000e+00 : f32
    %16 = vector.broadcast %cst_8 : f32 to vector<2x100xf32>
    %c0_9 = arith.constant 0 : index
    %c0_10 = arith.constant 0 : index
    %17 = vector.load %arg9[%c0_9, %c0_10] : memref<56x32xf32, #tpu.memory_space<vmem>>, vector<2x32xf32>
    %c0_11 = arith.constant 0 : index
    %c0_12 = arith.constant 0 : index
    %18 = vector.load %arg4[%c0_11, %c0_12] : memref<800x100xf32, #tpu.memory_space<vmem>>, vector<32x100xf32>
    %cst_13 = arith.constant dense<0.000000e+00> : vector<2x100xf32>
    %19 = tpu.matmul %17, %18, %cst_13 {dimension_numbers = #tpu.dot_dimension_numbers<[1], [0], [0], [1], [0, 0, 1, 1], [], []>} : vector<2x32xf32>, vector<32x100xf32>, vector<2x100xf32> -> vector<2x100xf32>
    %20 = arith.addf %16, %19 : vector<2x100xf32>
    %c2 = arith.constant 2 : index
    %c0_14 = arith.constant 0 : index
    %21 = vector.load %arg9[%c2, %c0_14] : memref<56x32xf32, #tpu.memory_space<vmem>>, vector<2x32xf32>
    %c32 = arith.constant 32 : index
    %c0_15 = arith.constant 0 : index
    %22 = vector.load %arg4[%c32, %c0_15] : memref<800x100xf32, #tpu.memory_space<vmem>>, vector<32x100xf32>
    %cst_16 = arith.constant dense<0.000000e+00> : vector<2x100xf32>
    %23 = tpu.matmul %21, %22, %cst_16 {dimension_numbers = #tpu.dot_dimension_numbers<[1], [0], [0], [1], [0, 0, 1, 1], [], []>} : vector<2x32xf32>, vector<32x100xf32>, vector<2x100xf32> -> vector<2x100xf32>
    %24 = arith.addf %20, %23 : vector<2x100xf32>
    %c4 = arith.constant 4 : index
    %c0_17 = arith.constant 0 : index
    %25 = vector.load %arg9[%c4, %c0_17] : memref<56x32xf32, #tpu.memory_space<vmem>>, vector<2x32xf32>
    %c64 = arith.constant 64 : index
    %c0_18 = arith.constant 0 : index
    %26 = vector.load %arg4[%c64, %c0_18] : memref<800x100xf32, #tpu.memory_space<vmem>>, vector<32x100xf32>
    %cst_19 = arith.constant dense<0.000000e+00> : vector<2x100xf32>
    %27 = tpu.matmul %25, %26, %cst_19 {dimension_numbers = #tpu.dot_dimension_numbers<[1], [0], [0], [1], [0, 0, 1, 1], [], []>} : vector<2x32xf32>, vector<32x100xf32>, vector<2x100xf32> -> vector<2x100xf32>
    %28 = arith.addf %24, %27 : vector<2x100xf32>
    %c6 = arith.constant 6 : index
    %c0_20 = arith.constant 0 : index
    %29 = vector.load %arg9[%c6, %c0_20] : memref<56x32xf32, #tpu.memory_space<vmem>>, vector<2x32xf32>
    %c96 = arith.constant 96 : index
    %c0_21 = arith.constant 0 : index
    %30 = vector.load %arg4[%c96, %c0_21] : memref<800x100xf32, #tpu.memory_space<vmem>>, vector<32x100xf32>
    %cst_22 = arith.constant dense<0.000000e+00> : vector<2x100xf32>
    %31 = tpu.matmul %29, %30, %cst_22 {dimension_numbers = #tpu.dot_dimension_numbers<[1], [0], [0], [1], [0, 0, 1, 1], [], []>} : vector<2x32xf32>, vector<32x100xf32>, vector<2x100xf32> -> vector<2x100xf32>
    %32 = arith.addf %28, %31 : vector<2x100xf32>
    %c8 = arith.constant 8 : index
    %c0_23 = arith.constant 0 : index
    %33 = vector.load %arg9[%c8, %c0_23] : memref<56x32xf32, #tpu.memory_space<vmem>>, vector<2x32xf32>
    %c128 = arith.constant 128 : index
    %c0_24 = arith.constant 0 : index
    %34 = vector.load %arg4[%c128, %c0_24] : memref<800x100xf32, #tpu.memory_space<vmem>>, vector<32x100xf32>
    %cst_25 = arith.constant dense<0.000000e+00> : vector<2x100xf32>
    %35 = tpu.matmul %33, %34, %cst_25 {dimension_numbers = #tpu.dot_dimension_numbers<[1], [0], [0], [1], [0, 0, 1, 1], [], []>} : vector<2x32xf32>, vector<32x100xf32>, vector<2x100xf32> -> vector<2x100xf32>
    %36 = arith.addf %32, %35 : vector<2x100xf32>
    %c10 = arith.constant 10 : index
    %c0_26 = arith.constant 0 : index
    %37 = vector.load %arg9[%c10, %c0_26] : memref<56x32xf32, #tpu.memory_space<vmem>>, vector<2x32xf32>
    %c160 = arith.constant 160 : index
    %c0_27 = arith.constant 0 : index
    %38 = vector.load %arg4[%c160, %c0_27] : memref<800x100xf32, #tpu.memory_space<vmem>>, vector<32x100xf32>
    %cst_28 = arith.constant dense<0.000000e+00> : vector<2x100xf32>
    %39 = tpu.matmul %37, %38, %cst_28 {dimension_numbers = #tpu.dot_dimension_numbers<[1], [0], [0], [1], [0, 0, 1, 1], [], []>} : vector<2x32xf32>, vector<32x100xf32>, vector<2x100xf32> -> vector<2x100xf32>
    %40 = arith.addf %36, %39 : vector<2x100xf32>
    %c12 = arith.constant 12 : index
    %c0_29 = arith.constant 0 : index
    %41 = vector.load %arg9[%c12, %c0_29] : memref<56x32xf32, #tpu.memory_space<vmem>>, vector<2x32xf32>
    %c192 = arith.constant 192 : index
    %c0_30 = arith.constant 0 : index
    %42 = vector.load %arg4[%c192, %c0_30] : memref<800x100xf32, #tpu.memory_space<vmem>>, vector<32x100xf32>
    %cst_31 = arith.constant dense<0.000000e+00> : vector<2x100xf32>
    %43 = tpu.matmul %41, %42, %cst_31 {dimension_numbers = #tpu.dot_dimension_numbers<[1], [0], [0], [1], [0, 0, 1, 1], [], []>} : vector<2x32xf32>, vector<32x100xf32>, vector<2x100xf32> -> vector<2x100xf32>
    %44 = arith.addf %40, %43 : vector<2x100xf32>
    %c14 = arith.constant 14 : index
    %c0_32 = arith.constant 0 : index
    %45 = vector.load %arg9[%c14, %c0_32] : memref<56x32xf32, #tpu.memory_space<vmem>>, vector<2x32xf32>
    %c224 = arith.constant 224 : index
    %c0_33 = arith.constant 0 : index
    %46 = vector.load %arg4[%c224, %c0_33] : memref<800x100xf32, #tpu.memory_space<vmem>>, vector<32x100xf32>
    %cst_34 = arith.constant dense<0.000000e+00> : vector<2x100xf32>
    %47 = tpu.matmul %45, %46, %cst_34 {dimension_numbers = #tpu.dot_dimension_numbers<[1], [0], [0], [1], [0, 0, 1, 1], [], []>} : vector<2x32xf32>, vector<32x100xf32>, vector<2x100xf32> -> vector<2x100xf32>
    %48 = arith.addf %44, %47 : vector<2x100xf32>
    %c16 = arith.constant 16 : index
    %c0_35 = arith.constant 0 : index
    %49 = vector.load %arg9[%c16, %c0_35] : memref<56x32xf32, #tpu.memory_space<vmem>>, vector<2x32xf32>
    %c256 = arith.constant 256 : index
    %c0_36 = arith.constant 0 : index
    %50 = vector.load %arg4[%c256, %c0_36] : memref<800x100xf32, #tpu.memory_space<vmem>>, vector<32x100xf32>
    %cst_37 = arith.constant dense<0.000000e+00> : vector<2x100xf32>
    %51 = tpu.matmul %49, %50, %cst_37 {dimension_numbers = #tpu.dot_dimension_numbers<[1], [0], [0], [1], [0, 0, 1, 1], [], []>} : vector<2x32xf32>, vector<32x100xf32>, vector<2x100xf32> -> vector<2x100xf32>
    %52 = arith.addf %48, %51 : vector<2x100xf32>
    %c18 = arith.constant 18 : index
    %c0_38 = arith.constant 0 : index
    %53 = vector.load %arg9[%c18, %c0_38] : memref<56x32xf32, #tpu.memory_space<vmem>>, vector<2x32xf32>
    %c288 = arith.constant 288 : index
    %c0_39 = arith.constant 0 : index
    %54 = vector.load %arg4[%c288, %c0_39] : memref<800x100xf32, #tpu.memory_space<vmem>>, vector<32x100xf32>
    %cst_40 = arith.constant dense<0.000000e+00> : vector<2x100xf32>
    %55 = tpu.matmul %53, %54, %cst_40 {dimension_numbers = #tpu.dot_dimension_numbers<[1], [0], [0], [1], [0, 0, 1, 1], [], []>} : vector<2x32xf32>, vector<32x100xf32>, vector<2x100xf32> -> vector<2x100xf32>
    %56 = arith.addf %52, %55 : vector<2x100xf32>
    %c20 = arith.constant 20 : index
    %c0_41 = arith.constant 0 : index
    %57 = vector.load %arg9[%c20, %c0_41] : memref<56x32xf32, #tpu.memory_space<vmem>>, vector<2x32xf32>
    %c320 = arith.constant 320 : index
    %c0_42 = arith.constant 0 : index
    %58 = vector.load %arg4[%c320, %c0_42] : memref<800x100xf32, #tpu.memory_space<vmem>>, vector<32x100xf32>
    %cst_43 = arith.constant dense<0.000000e+00> : vector<2x100xf32>
    %59 = tpu.matmul %57, %58, %cst_43 {dimension_numbers = #tpu.dot_dimension_numbers<[1], [0], [0], [1], [0, 0, 1, 1], [], []>} : vector<2x32xf32>, vector<32x100xf32>, vector<2x100xf32> -> vector<2x100xf32>
    %60 = arith.addf %56, %59 : vector<2x100xf32>
    %c22 = arith.constant 22 : index
    %c0_44 = arith.constant 0 : index
    %61 = vector.load %arg9[%c22, %c0_44] : memref<56x32xf32, #tpu.memory_space<vmem>>, vector<2x32xf32>
    %c352 = arith.constant 352 : index
    %c0_45 = arith.constant 0 : index
    %62 = vector.load %arg4[%c352, %c0_45] : memref<800x100xf32, #tpu.memory_space<vmem>>, vector<32x100xf32>
    %cst_46 = arith.constant dense<0.000000e+00> : vector<2x100xf32>
    %63 = tpu.matmul %61, %62, %cst_46 {dimension_numbers = #tpu.dot_dimension_numbers<[1], [0], [0], [1], [0, 0, 1, 1], [], []>} : vector<2x32xf32>, vector<32x100xf32>, vector<2x100xf32> -> vector<2x100xf32>
    %64 = arith.addf %60, %63 : vector<2x100xf32>
    %c24 = arith.constant 24 : index
    %c0_47 = arith.constant 0 : index
    %65 = vector.load %arg9[%c24, %c0_47] : memref<56x32xf32, #tpu.memory_space<vmem>>, vector<2x32xf32>
    %c384 = arith.constant 384 : index
    %c0_48 = arith.constant 0 : index
    %66 = vector.load %arg4[%c384, %c0_48] : memref<800x100xf32, #tpu.memory_space<vmem>>, vector<32x100xf32>
    %cst_49 = arith.constant dense<0.000000e+00> : vector<2x100xf32>
    %67 = tpu.matmul %65, %66, %cst_49 {dimension_numbers = #tpu.dot_dimension_numbers<[1], [0], [0], [1], [0, 0, 1, 1], [], []>} : vector<2x32xf32>, vector<32x100xf32>, vector<2x100xf32> -> vector<2x100xf32>
    %68 = arith.addf %64, %67 : vector<2x100xf32>
    %c26 = arith.constant 26 : index
    %c0_50 = arith.constant 0 : index
    %69 = vector.load %arg9[%c26, %c0_50] : memref<56x32xf32, #tpu.memory_space<vmem>>, vector<2x32xf32>
    %c416 = arith.constant 416 : index
    %c0_51 = arith.constant 0 : index
    %70 = vector.load %arg4[%c416, %c0_51] : memref<800x100xf32, #tpu.memory_space<vmem>>, vector<32x100xf32>
    %cst_52 = arith.constant dense<0.000000e+00> : vector<2x100xf32>
    %71 = tpu.matmul %69, %70, %cst_52 {dimension_numbers = #tpu.dot_dimension_numbers<[1], [0], [0], [1], [0, 0, 1, 1], [], []>} : vector<2x32xf32>, vector<32x100xf32>, vector<2x100xf32> -> vector<2x100xf32>
    %72 = arith.addf %68, %71 : vector<2x100xf32>
    %c28 = arith.constant 28 : index
    %c0_53 = arith.constant 0 : index
    %73 = vector.load %arg9[%c28, %c0_53] : memref<56x32xf32, #tpu.memory_space<vmem>>, vector<2x32xf32>
    %c448 = arith.constant 448 : index
    %c0_54 = arith.constant 0 : index
    %74 = vector.load %arg4[%c448, %c0_54] : memref<800x100xf32, #tpu.memory_space<vmem>>, vector<32x100xf32>
    %cst_55 = arith.constant dense<0.000000e+00> : vector<2x100xf32>
    %75 = tpu.matmul %73, %74, %cst_55 {dimension_numbers = #tpu.dot_dimension_numbers<[1], [0], [0], [1], [0, 0, 1, 1], [], []>} : vector<2x32xf32>, vector<32x100xf32>, vector<2x100xf32> -> vector<2x100xf32>
    %76 = arith.addf %72, %75 : vector<2x100xf32>
    %c30 = arith.constant 30 : index
    %c0_56 = arith.constant 0 : index
    %77 = vector.load %arg9[%c30, %c0_56] : memref<56x32xf32, #tpu.memory_space<vmem>>, vector<2x32xf32>
    %c480 = arith.constant 480 : index
    %c0_57 = arith.constant 0 : index
    %78 = vector.load %arg4[%c480, %c0_57] : memref<800x100xf32, #tpu.memory_space<vmem>>, vector<32x100xf32>
    %cst_58 = arith.constant dense<0.000000e+00> : vector<2x100xf32>
    %79 = tpu.matmul %77, %78, %cst_58 {dimension_numbers = #tpu.dot_dimension_numbers<[1], [0], [0], [1], [0, 0, 1, 1], [], []>} : vector<2x32xf32>, vector<32x100xf32>, vector<2x100xf32> -> vector<2x100xf32>
    %80 = arith.addf %76, %79 : vector<2x100xf32>
    %c32_59 = arith.constant 32 : index
    %c0_60 = arith.constant 0 : index
    %81 = vector.load %arg9[%c32_59, %c0_60] : memref<56x32xf32, #tpu.memory_space<vmem>>, vector<2x32xf32>
    %c512 = arith.constant 512 : index
    %c0_61 = arith.constant 0 : index
    %82 = vector.load %arg4[%c512, %c0_61] : memref<800x100xf32, #tpu.memory_space<vmem>>, vector<32x100xf32>
    %cst_62 = arith.constant dense<0.000000e+00> : vector<2x100xf32>
    %83 = tpu.matmul %81, %82, %cst_62 {dimension_numbers = #tpu.dot_dimension_numbers<[1], [0], [0], [1], [0, 0, 1, 1], [], []>} : vector<2x32xf32>, vector<32x100xf32>, vector<2x100xf32> -> vector<2x100xf32>
    %84 = arith.addf %80, %83 : vector<2x100xf32>
    %c34 = arith.constant 34 : index
    %c0_63 = arith.constant 0 : index
    %85 = vector.load %arg9[%c34, %c0_63] : memref<56x32xf32, #tpu.memory_space<vmem>>, vector<2x32xf32>
    %c544 = arith.constant 544 : index
    %c0_64 = arith.constant 0 : index
    %86 = vector.load %arg4[%c544, %c0_64] : memref<800x100xf32, #tpu.memory_space<vmem>>, vector<32x100xf32>
    %cst_65 = arith.constant dense<0.000000e+00> : vector<2x100xf32>
    %87 = tpu.matmul %85, %86, %cst_65 {dimension_numbers = #tpu.dot_dimension_numbers<[1], [0], [0], [1], [0, 0, 1, 1], [], []>} : vector<2x32xf32>, vector<32x100xf32>, vector<2x100xf32> -> vector<2x100xf32>
    %88 = arith.addf %84, %87 : vector<2x100xf32>
    %c36 = arith.constant 36 : index
    %c0_66 = arith.constant 0 : index
    %89 = vector.load %arg9[%c36, %c0_66] : memref<56x32xf32, #tpu.memory_space<vmem>>, vector<2x32xf32>
    %c576 = arith.constant 576 : index
    %c0_67 = arith.constant 0 : index
    %90 = vector.load %arg4[%c576, %c0_67] : memref<800x100xf32, #tpu.memory_space<vmem>>, vector<32x100xf32>
    %cst_68 = arith.constant dense<0.000000e+00> : vector<2x100xf32>
    %91 = tpu.matmul %89, %90, %cst_68 {dimension_numbers = #tpu.dot_dimension_numbers<[1], [0], [0], [1], [0, 0, 1, 1], [], []>} : vector<2x32xf32>, vector<32x100xf32>, vector<2x100xf32> -> vector<2x100xf32>
    %92 = arith.addf %88, %91 : vector<2x100xf32>
    %c38 = arith.constant 38 : index
    %c0_69 = arith.constant 0 : index
    %93 = vector.load %arg9[%c38, %c0_69] : memref<56x32xf32, #tpu.memory_space<vmem>>, vector<2x32xf32>
    %c608 = arith.constant 608 : index
    %c0_70 = arith.constant 0 : index
    %94 = vector.load %arg4[%c608, %c0_70] : memref<800x100xf32, #tpu.memory_space<vmem>>, vector<32x100xf32>
    %cst_71 = arith.constant dense<0.000000e+00> : vector<2x100xf32>
    %95 = tpu.matmul %93, %94, %cst_71 {dimension_numbers = #tpu.dot_dimension_numbers<[1], [0], [0], [1], [0, 0, 1, 1], [], []>} : vector<2x32xf32>, vector<32x100xf32>, vector<2x100xf32> -> vector<2x100xf32>
    %96 = arith.addf %92, %95 : vector<2x100xf32>
    %c40 = arith.constant 40 : index
    %c0_72 = arith.constant 0 : index
    %97 = vector.load %arg9[%c40, %c0_72] : memref<56x32xf32, #tpu.memory_space<vmem>>, vector<2x32xf32>
    %c640 = arith.constant 640 : index
    %c0_73 = arith.constant 0 : index
    %98 = vector.load %arg4[%c640, %c0_73] : memref<800x100xf32, #tpu.memory_space<vmem>>, vector<32x100xf32>
    %cst_74 = arith.constant dense<0.000000e+00> : vector<2x100xf32>
    %99 = tpu.matmul %97, %98, %cst_74 {dimension_numbers = #tpu.dot_dimension_numbers<[1], [0], [0], [1], [0, 0, 1, 1], [], []>} : vector<2x32xf32>, vector<32x100xf32>, vector<2x100xf32> -> vector<2x100xf32>
    %100 = arith.addf %96, %99 : vector<2x100xf32>
    %c42 = arith.constant 42 : index
    %c0_75 = arith.constant 0 : index
    %101 = vector.load %arg9[%c42, %c0_75] : memref<56x32xf32, #tpu.memory_space<vmem>>, vector<2x32xf32>
    %c672 = arith.constant 672 : index
    %c0_76 = arith.constant 0 : index
    %102 = vector.load %arg4[%c672, %c0_76] : memref<800x100xf32, #tpu.memory_space<vmem>>, vector<32x100xf32>
    %cst_77 = arith.constant dense<0.000000e+00> : vector<2x100xf32>
    %103 = tpu.matmul %101, %102, %cst_77 {dimension_numbers = #tpu.dot_dimension_numbers<[1], [0], [0], [1], [0, 0, 1, 1], [], []>} : vector<2x32xf32>, vector<32x100xf32>, vector<2x100xf32> -> vector<2x100xf32>
    %104 = arith.addf %100, %103 : vector<2x100xf32>
    %c44 = arith.constant 44 : index
    %c0_78 = arith.constant 0 : index
    %105 = vector.load %arg9[%c44, %c0_78] : memref<56x32xf32, #tpu.memory_space<vmem>>, vector<2x32xf32>
    %c704 = arith.constant 704 : index
    %c0_79 = arith.constant 0 : index
    %106 = vector.load %arg4[%c704, %c0_79] : memref<800x100xf32, #tpu.memory_space<vmem>>, vector<32x100xf32>
    %cst_80 = arith.constant dense<0.000000e+00> : vector<2x100xf32>
    %107 = tpu.matmul %105, %106, %cst_80 {dimension_numbers = #tpu.dot_dimension_numbers<[1], [0], [0], [1], [0, 0, 1, 1], [], []>} : vector<2x32xf32>, vector<32x100xf32>, vector<2x100xf32> -> vector<2x100xf32>
    %108 = arith.addf %104, %107 : vector<2x100xf32>
    %c46 = arith.constant 46 : index
    %c0_81 = arith.constant 0 : index
    %109 = vector.load %arg9[%c46, %c0_81] : memref<56x32xf32, #tpu.memory_space<vmem>>, vector<2x32xf32>
    %c736 = arith.constant 736 : index
    %c0_82 = arith.constant 0 : index
    %110 = vector.load %arg4[%c736, %c0_82] : memref<800x100xf32, #tpu.memory_space<vmem>>, vector<32x100xf32>
    %cst_83 = arith.constant dense<0.000000e+00> : vector<2x100xf32>
    %111 = tpu.matmul %109, %110, %cst_83 {dimension_numbers = #tpu.dot_dimension_numbers<[1], [0], [0], [1], [0, 0, 1, 1], [], []>} : vector<2x32xf32>, vector<32x100xf32>, vector<2x100xf32> -> vector<2x100xf32>
    %112 = arith.addf %108, %111 : vector<2x100xf32>
    %c48 = arith.constant 48 : index
    %c0_84 = arith.constant 0 : index
    %113 = vector.load %arg9[%c48, %c0_84] : memref<56x32xf32, #tpu.memory_space<vmem>>, vector<2x32xf32>
    %c768 = arith.constant 768 : index
    %c0_85 = arith.constant 0 : index
    %114 = vector.load %arg4[%c768, %c0_85] : memref<800x100xf32, #tpu.memory_space<vmem>>, vector<32x100xf32>
    %cst_86 = arith.constant dense<0.000000e+00> : vector<2x100xf32>
    %115 = tpu.matmul %113, %114, %cst_86 {dimension_numbers = #tpu.dot_dimension_numbers<[1], [0], [0], [1], [0, 0, 1, 1], [], []>} : vector<2x32xf32>, vector<32x100xf32>, vector<2x100xf32> -> vector<2x100xf32>
    %116 = arith.addf %112, %115 : vector<2x100xf32>
    %c0_87 = arith.constant 0 : index
    %c0_88 = arith.constant 0 : index
    %117 = vector.load %arg5[%c0_87, %c0_88] : memref<1x100xf32, #tpu.memory_space<vmem>>, vector<1x100xf32>
    %118 = vector.broadcast %117 : vector<1x100xf32> to vector<2x100xf32>
    %119 = arith.addf %116, %118 : vector<2x100xf32>
    %c0_89 = arith.constant 0 : index
    %c0_90 = arith.constant 0 : index
    %120 = vector.load %arg6[%c0_89, %c0_90] : memref<100x2xf32, #tpu.memory_space<vmem>>, vector<100x2xf32>
    %cst_91 = arith.constant dense<0.000000e+00> : vector<2x2xf32>
    %121 = tpu.matmul %119, %120, %cst_91 {dimension_numbers = #tpu.dot_dimension_numbers<[1], [0], [0], [1], [0, 0, 1, 1], [], []>} : vector<2x100xf32>, vector<100x2xf32>, vector<2x2xf32> -> vector<2x2xf32>
    %c0_92 = arith.constant 0 : index
    %c0_93 = arith.constant 0 : index
    %122 = vector.load %arg7[%c0_92, %c0_93] : memref<1x2xf32, #tpu.memory_space<vmem>>, vector<1x2xf32>
    %123 = vector.broadcast %122 : vector<1x2xf32> to vector<2x2xf32>
    %124 = arith.addf %121, %123 : vector<2x2xf32>
    %c0_94 = arith.constant 0 : index
    %c0_95 = arith.constant 0 : index
    %125 = vector.load %arg8[%c0_94, %c0_95] : memref<2x2xf32, #tpu.memory_space<vmem>>, vector<2x2xf32>
    tpu.vector_store %arg8[%c0_94, %c0_95], %124 {strides = array<i32>} : memref<2x2xf32, #tpu.memory_space<vmem>>, vector<2x2xf32>,
    return
  }
  func.func @transform_0(%arg0: i32) -> (i32, i32) {
    %c0_i32 = arith.constant 0 : i32
    %c0_i32_0 = arith.constant 0 : i32
    %c0_i32_1 = arith.constant 0 : i32
    return %c0_i32, %c0_i32_0 : i32, i32
  }
  func.func @transform_1(%arg0: i32) -> (i32, i32) {
    %c0_i32 = arith.constant 0 : i32
    %c0_i32_0 = arith.constant 0 : i32
    %c0_i32_1 = arith.constant 0 : i32
    return %c0_i32, %c0_i32_0 : i32, i32
  }
  func.func @transform_2(%arg0: i32) -> (i32, i32) {
    %c0_i32 = arith.constant 0 : i32
    %c0_i32_0 = arith.constant 0 : i32
    %c0_i32_1 = arith.constant 0 : i32
    return %c0_i32, %c0_i32_0 : i32, i32
  }
  func.func @transform_3(%arg0: i32) -> (i32, i32) {
    %c0_i32 = arith.constant 0 : i32
    %c0_i32_0 = arith.constant 0 : i32
    %c0_i32_1 = arith.constant 0 : i32
    return %c0_i32, %c0_i32_0 : i32, i32
  }
  func.func @transform_4(%arg0: i32) -> (i32, i32) {
    %c0_i32 = arith.constant 0 : i32
    %c0_i32_0 = arith.constant 0 : i32
    %c0_i32_1 = arith.constant 0 : i32
    return %c0_i32, %c0_i32_0 : i32, i32
  }
  func.func @transform_5(%arg0: i32) -> (i32, i32) {
    %c0_i32 = arith.constant 0 : i32
    %c0_i32_0 = arith.constant 0 : i32
    %c0_i32_1 = arith.constant 0 : i32
    return %c0_i32, %c0_i32_0 : i32, i32
  }
  func.func @transform_6(%arg0: i32) -> (i32, i32) {
    %c0_i32 = arith.constant 0 : i32
    %c0_i32_0 = arith.constant 0 : i32
    %c0_i32_1 = arith.constant 0 : i32
    return %c0_i32, %c0_i32_0 : i32, i32
  }
  func.func @transform_7(%arg0: i32) -> (i32, i32) {
    %c0_i32 = arith.constant 0 : i32
    %c0_i32_0 = arith.constant 0 : i32
    %c0_i32_1 = arith.constant 0 : i32
    return %c0_i32, %c0_i32_0 : i32, i32
  }
}

</mosaic_0001>

<bundles_post_ra>
// kernel: cnn_forward.2
= control target key start
LH: loop header
LB: loop body
LE: loop exit
PB: predicated region body
PF: predicated region fallthrough
CT: control target
= control target key end

     0   :  { %vm135_vm0 = vcmask 1040384   ;;  %v1598_v3 = vmov 0.0   ;;  %v1599_v8 = vmov 0   ;;  %vm1600_vm1 = vmmov 1   ;;  %s2172_s0 = inlined_call_operand.vmem [shape: f32[25,3584], index: 0, kind: input, shape index: {}]   ;;  %s2173_s1 = inlined_call_operand.vmem [shape: f32[16,25], index: 1, kind: input, shape index: {}]   ;;  %s2174_s2 = inlined_call_operand.vmem [shape: f32[16,1], index: 2, kind: input, shape index: {}]   ;;  %s2175_s3 = inlined_call_operand.vmem [shape: f32[16,896], index: 3, kind: output, shape index: {}]  }
   0x1   :  { %v17_v0 = vld [vmem:[%s2172_s0 + $0x8] sm:$0xff]  ;;  %v19_v2 = vld [vmem:[%s2172_s0 + $0x18] sm:$0xff]  ;;  %284 = vmatprep.mubr.f32.mxu0 %v1598_v3  ;;  %361 = vmatprep.mubr.f32.mxu1 %v1598_v3  ;;  %v16_v6 = vld [vmem:[%s2172_s0] sm:$0xff]  ;;  %vm128_vm3 = vcmask 203776  }
   0x2   :  { %v45_v1 = vld [vmem:[%s2172_s0 + $0xe8] sm:$0xff]  ;;  %v47_v5 = vld [vmem:[%s2172_s0 + $0xf8] sm:$0xff]  ;;  %v44_v7 = vld [vmem:[%s2172_s0 + $0xe0] sm:$0xff]  ;;  %1597 = vset.pattern.permute.xlu0 %v1599_v8 }
   0x3   :  { %v1454_v4 = vpack.c.bf16 %v45_v1, %v17_v0  ;;  %v1464_v9 = vpack.c.bf16 %v47_v5, %v19_v2  ;;  %v1456_v10 = vpack.c.bf16 %v44_v7, %v16_v6  ;;  %v18_v11 = vld [vmem:[%s2172_s0 + $0x10] sm:$0xff]  ;;  %v73_v13 = vld [vmem:[%s2172_s0 + $0x1c8] sm:$0xff]  ;;  %vm1654_vm2 = vmpackc.low %vm135_vm0, %vm1600_vm1 }
   0x4   :  { %v46_v12 = vld [vmem:[%s2172_s0 + $0xf0] sm:$0xff]  ;;  %v101_v15 = vld [vmem:[%s2172_s0 + $0x2a8] sm:$0x1]  ;;  %v75_v17 = vld [vmem:[%s2172_s0 + $0x1d8] sm:$0xff] }
   0x5   :  { %1455 = vmatprep.subr.bf16.mxu0 %v1454_v4  ;;  %v1466_v14 = vpack.c.bf16 %v46_v12, %v18_v11  ;;  %1465 = vmatprep.subr.bf16.mxu1 %v1464_v9  ;;  %v1458_v18 = vpack.c.bf16 %v101_v15, %v73_v13  ;;  %v103_v19 = vld [vmem:[%s2172_s0 + $0x2b8] sm:$0x1]  ;;  %v72_v20 = vld [vmem:[%s2172_s0 + $0x1c0] sm:$0xff]  ;;  %v74_v24 = vld [vmem:[%s2172_s0 + $0x1d0] sm:$0xff] }
   0x6   :  { %1457 = vmatpush1.bf16.msra.mxu0 %v1456_v10  ;;  %v100_v21 = vld [vmem:[%s2172_s0 + $0x2a0] sm:$0x1]  ;;  %v1468_v22 = vpack.c.bf16 %v103_v19, %v75_v17  ;;  %v102_v25 = vld [vmem:[%s2172_s0 + $0x2b0] sm:$0x1]  ;;  %v21_v27 = vld [vmem:[%s2172_s0 + $0x28] sm:$0xff] }
   0x7   :  { %1467 = vmatpush1.bf16.msra.mxu1 %v1466_v14  ;;  %v1461_v23 = vpack.c.bf16 %v100_v21, %v72_v20  ;;  %1460 = vmatprep.subr.msk.bf16.mxu0 %vm1654_vm2, %v1458_v18  ;;  %v1471_v26 = vpack.c.bf16 %v102_v25, %v74_v24  ;;  %v49_v28 = vld [vmem:[%s2172_s0 + $0x108] sm:$0xff]  ;;  %v23_v29 = vld [vmem:[%s2172_s0 + $0x38] sm:$0xff]  ;;  %v20_v32 = vld [vmem:[%s2172_s0 + $0x20] sm:$0xff] }
   0x8   :  { %1470 = vmatprep.subr.msk.bf16.mxu1 %vm1654_vm2, %v1468_v22  ;;  %v1474_v30 = vpack.c.bf16 %v49_v28, %v21_v27  ;;  %v51_v31 = vld [vmem:[%s2172_s0 + $0x118] sm:$0xff]  ;;  %v48_v33 = vld [vmem:[%s2172_s0 + $0x100] sm:$0xff]  ;;  %v22_v37 = vld [vmem:[%s2172_s0 + $0x30] sm:$0xff] }
   0x9   :  { %v1703_v34 = vld [vmem:[%s2173_s1] sm:$0xff]  ;;  %v1484_v35 = vpack.c.bf16 %v51_v31, %v23_v29  ;;  %v1476_v36 = vpack.c.bf16 %v48_v33, %v20_v32  ;;  %v50_v38 = vld [vmem:[%s2172_s0 + $0x110] sm:$0xff]  ;;  %v77_v40 = vld [vmem:[%s2172_s0 + $0x1e8] sm:$0xff] }
   0xa   :  { %1463 = vmatpush1.bf16.msk.msra.mxu0 %vm1654_vm2, %v1461_v23  ;;  %v1486_v39 = vpack.c.bf16 %v50_v38, %v22_v37  ;;  %v105_v41 = vld [vmem:[%s2172_s0 + $0x2c8] sm:$0x1]  ;;  %v79_v42 = vld [vmem:[%s2172_s0 + $0x1f8] sm:$0xff]  ;;  %v76_v46 = vld [vmem:[%s2172_s0 + $0x1e0] sm:$0xff] }
   0xb   :  { %1473 = vmatpush1.bf16.msk.msra.mxu1 %vm1654_vm2, %v1471_v26  ;;  %1475 = vmatprep.subr.bf16.mxu0 %v1474_v30  ;;  %v1725_v43 = vld [vmem:[%s2173_s1 + $0x8] sm:$0xff]  ;;  %v1478_v44 = vpack.c.bf16 %v105_v41, %v77_v40  ;;  %v107_v45 = vld [vmem:[%s2172_s0 + $0x2d8] sm:$0x1]  ;;  %v104_v47 = vld [vmem:[%s2172_s0 + $0x2c0] sm:$0x1] }
   0xc   :  { %1485 = vmatprep.subr.bf16.mxu1 %v1484_v35  ;;  %v1488_v48 = vpack.c.bf16 %v107_v45, %v79_v42  ;;  %v78_v49 = vld [vmem:[%s2172_s0 + $0x1f0] sm:$0xff]  ;;  %v25_v51 = vld [vmem:[%s2172_s0 + $0x48] sm:$0xff]  ;;  %v1481_v52 = vpack.c.bf16 %v104_v47, %v76_v46  ;;  %v27_v54 = vld [vmem:[%s2172_s0 + $0x58] sm:$0xff] }
   0xd   :  { %1400 = vmatmul.mubr.msk.f32.vlgmr.msra.gmra.mrb[0].mxu0 %vm128_vm3, %v1703_v34  ;;  %v106_v50 = vld [vmem:[%s2172_s0 + $0x2d0] sm:$0x1]  ;;  %v53_v53 = vld [vmem:[%s2172_s0 + $0x128] sm:$0xff]  ;;  %v55_v55 = vld [vmem:[%s2172_s0 + $0x138] sm:$0xff] }
   0xe   :  { %1404 = vmatmul.mubr.msk.f32.vlgmr.msra.gmra.mrb[0].mxu1 %vm128_vm3, %v1703_v34  ;;  %1477 = vmatpush1.bf16.msra.mxu0 %v1476_v36  ;;  %v1491_v56 = vpack.c.bf16 %v106_v50, %v78_v49  ;;  %v24_v57 = vld [vmem:[%s2172_s0 + $0x40] sm:$0xff]  ;;  %v1494_v59 = vpack.c.bf16 %v53_v53, %v25_v51  ;;  %v26_v60 = vld [vmem:[%s2172_s0 + $0x50] sm:$0xff]  ;;  %v1504_v62 = vpack.c.bf16 %v55_v55, %v27_v54  ;;  %v81_v63 = vld [vmem:[%s2172_s0 + $0x208] sm:$0xff] }
   0xf   :  { %1487 = vmatpush1.bf16.msra.mxu1 %v1486_v39  ;;  %290 = vmatprep.mubr.f32.mxu0 %v1598_v3  ;;  %v52_v58 = vld [vmem:[%s2172_s0 + $0x120] sm:$0xff]  ;;  %v54_v61 = vld [vmem:[%s2172_s0 + $0x130] sm:$0xff]  ;;  %v109_v0 = vld [vmem:[%s2172_s0 + $0x2e8] sm:$0x1] }
  0x10   :  { %367 = vmatprep.mubr.f32.mxu1 %v1598_v3  ;;  %1480 = vmatprep.subr.msk.bf16.mxu0 %vm1654_vm2, %v1478_v44  ;;  %v1496_v1 = vpack.c.bf16 %v52_v58, %v24_v57  ;;  %v83_v2 = vld [vmem:[%s2172_s0 + $0x218] sm:$0xff]  ;;  %v1506_v5 = vpack.c.bf16 %v54_v61, %v26_v60  ;;  %v80_v6 = vld [vmem:[%s2172_s0 + $0x200] sm:$0xff]  ;;  %v1498_v8 = vpack.c.bf16 %v109_v0, %v81_v63  ;;  %v82_v9 = vld [vmem:[%s2172_s0 + $0x210] sm:$0xff] }
  0x11   :  { %1401 = vmatmul.mubr.msk.f32.gmra.mrb[2].mxu0 %vm128_vm3, %v1725_v43  ;;  %1490 = vmatprep.subr.msk.bf16.mxu1 %vm1654_vm2, %v1488_v48  ;;  %v111_v4 = vld [vmem:[%s2172_s0 + $0x2f8] sm:$0x1]  ;;  %v108_v7 = vld [vmem:[%s2172_s0 + $0x2e0] sm:$0x1]  ;;  %v110_v10 = vld [vmem:[%s2172_s0 + $0x2f0] sm:$0x1] }
  0x12   :  { %1405 = vmatmul.mubr.msk.f32.gmra.mrb[2].mxu1 %vm128_vm3, %v1725_v43  ;;  %1483 = vmatpush1.bf16.msk.msra.mxu0 %vm1654_vm2, %v1481_v52  ;;  %v1508_v11 = vpack.c.bf16 %v111_v4, %v83_v2  ;;  %v29_v12 = vld [vmem:[%s2172_s0 + $0x68] sm:$0xff]  ;;  %v1501_v14 = vpack.c.bf16 %v108_v7, %v80_v6  ;;  %v31_v15 = vld [vmem:[%s2172_s0 + $0x78] sm:$0xff]  ;;  %v1511_v18 = vpack.c.bf16 %v110_v10, %v82_v9  ;;  %v28_v19 = vld [vmem:[%s2172_s0 + $0x60] sm:$0xff] }
  0x13   :  { %1493 = vmatpush1.bf16.msk.msra.mxu1 %vm1654_vm2, %v1491_v56  ;;  %438 = vmatprep.mubr.f32.mxu0 %v1598_v3  ;;  %v57_v13 = vld [vmem:[%s2172_s0 + $0x148] sm:$0xff]  ;;  %v59_v17 = vld [vmem:[%s2172_s0 + $0x158] sm:$0xff]  ;;  %v56_v20 = vld [vmem:[%s2172_s0 + $0x140] sm:$0xff] }
  0x14   :  { %515 = vmatprep.mubr.f32.mxu1 %v1598_v3  ;;  %1495 = vmatprep.subr.bf16.mxu0 %v1494_v59  ;;  %v1514_v21 = vpack.c.bf16 %v57_v13, %v29_v12  ;;  %v30_v22 = vld [vmem:[%s2172_s0 + $0x70] sm:$0xff]  ;;  %v1524_v24 = vpack.c.bf16 %v59_v17, %v31_v15  ;;  %v85_v25 = vld [vmem:[%s2172_s0 + $0x228] sm:$0xff]  ;;  %v1516_v27 = vpack.c.bf16 %v56_v20, %v28_v19  ;;  %v87_v28 = vld [vmem:[%s2172_s0 + $0x238] sm:$0xff] }
  0x15   :  { %1408 = vmatmul.mubr.msk.f32.vlgmr.msra.gmra.mrb[4].mxu0 %vm128_vm3, %v1703_v34  ;;  %1505 = vmatprep.subr.bf16.mxu1 %v1504_v62  ;;  %v58_v23 = vld [vmem:[%s2172_s0 + $0x150] sm:$0xff]  ;;  %v113_v26 = vld [vmem:[%s2172_s0 + $0x308] sm:$0x1]  ;;  %v115_v29 = vld [vmem:[%s2172_s0 + $0x318] sm:$0x1] }
  0x16   :  { %1412 = vmatmul.mubr.msk.f32.vlgmr.msra.gmra.mrb[4].mxu1 %vm128_vm3, %v1703_v34  ;;  %1497 = vmatpush1.bf16.msra.mxu0 %v1496_v1  ;;  %v1526_v30 = vpack.c.bf16 %v58_v23, %v30_v22  ;;  %v84_v31 = vld [vmem:[%s2172_s0 + $0x220] sm:$0xff]  ;;  %v1518_v33 = vpack.c.bf16 %v113_v26, %v85_v25  ;;  %v86_v35 = vld [vmem:[%s2172_s0 + $0x230] sm:$0xff]  ;;  %v1528_v37 = vpack.c.bf16 %v115_v29, %v87_v28  ;;  %v33_v38 = vld [vmem:[%s2172_s0 + $0x88] sm:$0xff] }
  0x17   :  { %1507 = vmatpush1.bf16.msra.mxu1 %v1506_v5  ;;  %444 = vmatprep.mubr.f32.mxu0 %v1598_v3  ;;  %v112_v32 = vld [vmem:[%s2172_s0 + $0x300] sm:$0x1]  ;;  %v114_v36 = vld [vmem:[%s2172_s0 + $0x310] sm:$0x1]  ;;  %v61_v39 = vld [vmem:[%s2172_s0 + $0x168] sm:$0xff] }
  0x18   :  { %521 = vmatprep.mubr.f32.mxu1 %v1598_v3  ;;  %1500 = vmatprep.subr.msk.bf16.mxu0 %vm1654_vm2, %v1498_v8  ;;  %v1521_v40 = vpack.c.bf16 %v112_v32, %v84_v31  ;;  %v35_v41 = vld [vmem:[%s2172_s0 + $0x98] sm:$0xff]  ;;  %v1531_v44 = vpack.c.bf16 %v114_v36, %v86_v35  ;;  %v32_v45 = vld [vmem:[%s2172_s0 + $0x80] sm:$0xff]  ;;  %v1534_v47 = vpack.c.bf16 %v61_v39, %v33_v38  ;;  %v34_v48 = vld [vmem:[%s2172_s0 + $0x90] sm:$0xff] }
  0x19   :  { %1409 = vmatmul.mubr.msk.f32.gmra.mrb[6].mxu0 %vm128_vm3, %v1725_v43  ;;  %1510 = vmatprep.subr.msk.bf16.mxu1 %vm1654_vm2, %v1508_v11  ;;  %v63_v42 = vld [vmem:[%s2172_s0 + $0x178] sm:$0xff]  ;;  %v60_v46 = vld [vmem:[%s2172_s0 + $0x160] sm:$0xff]  ;;  %v62_v49 = vld [vmem:[%s2172_s0 + $0x170] sm:$0xff] }
  0x1a   :  { %1413 = vmatmul.mubr.msk.f32.gmra.mrb[6].mxu1 %vm128_vm3, %v1725_v43  ;;  %1503 = vmatpush1.bf16.msk.msra.mxu0 %vm1654_vm2, %v1501_v14  ;;  %v1544_v50 = vpack.c.bf16 %v63_v42, %v35_v41  ;;  %v89_v51 = vld [vmem:[%s2172_s0 + $0x248] sm:$0xff]  ;;  %v1536_v53 = vpack.c.bf16 %v60_v46, %v32_v45  ;;  %v91_v54 = vld [vmem:[%s2172_s0 + $0x258] sm:$0xff]  ;;  %v1546_v56 = vpack.c.bf16 %v62_v49, %v34_v48  ;;  %v88_v57 = vld [vmem:[%s2172_s0 + $0x240] sm:$0xff] }
  0x1b   :  { %1513 = vmatpush1.bf16.msk.msra.mxu1 %vm1654_vm2, %v1511_v18  ;;  %592 = vmatprep.mubr.f32.mxu0 %v1598_v3  ;;  %v117_v52 = vld [vmem:[%s2172_s0 + $0x328] sm:$0x1]  ;;  %v119_v55 = vld [vmem:[%s2172_s0 + $0x338] sm:$0x1]  ;;  %v116_v58 = vld [vmem:[%s2172_s0 + $0x320] sm:$0x1] }
  0x1c   :  { %669 = vmatprep.mubr.f32.mxu1 %v1598_v3  ;;  %1515 = vmatprep.subr.bf16.mxu0 %v1514_v21  ;;  %v1538_v59 = vpack.c.bf16 %v117_v52, %v89_v51  ;;  %v90_v60 = vld [vmem:[%s2172_s0 + $0x250] sm:$0xff]  ;;  %v1548_v62 = vpack.c.bf16 %v119_v55, %v91_v54  ;;  %v37_v63 = vld [vmem:[%s2172_s0 + $0xa8] sm:$0xff]  ;;  %v1541_v1 = vpack.c.bf16 %v116_v58, %v88_v57  ;;  %v39_v2 = vld [vmem:[%s2172_s0 + $0xb8] sm:$0xff] }
  0x1d   :  { %1416 = vmatmul.mubr.msk.f32.vlgmr.msra.gmra.mrb[8].mxu0 %vm128_vm3, %v1703_v34  ;;  %1525 = vmatprep.subr.bf16.mxu1 %v1524_v24  ;;  %v118_v61 = vld [vmem:[%s2172_s0 + $0x330] sm:$0x1]  ;;  %v65_v0 = vld [vmem:[%s2172_s0 + $0x188] sm:$0xff]  ;;  %v67_v4 = vld [vmem:[%s2172_s0 + $0x198] sm:$0xff] }
  0x1e   :  { %1420 = vmatmul.mubr.msk.f32.vlgmr.msra.gmra.mrb[8].mxu1 %vm128_vm3, %v1703_v34  ;;  %1517 = vmatpush1.bf16.msra.mxu0 %v1516_v27  ;;  %v1551_v5 = vpack.c.bf16 %v118_v61, %v90_v60  ;;  %v36_v6 = vld [vmem:[%s2172_s0 + $0xa0] sm:$0xff]  ;;  %v1554_v8 = vpack.c.bf16 %v65_v0, %v37_v63  ;;  %v38_v9 = vld [vmem:[%s2172_s0 + $0xb0] sm:$0xff]  ;;  %v1564_v11 = vpack.c.bf16 %v67_v4, %v39_v2  ;;  %v93_v12 = vld [vmem:[%s2172_s0 + $0x268] sm:$0xff] }
  0x1f   :  { %1527 = vmatpush1.bf16.msra.mxu1 %v1526_v30  ;;  %598 = vmatprep.mubr.f32.mxu0 %v1598_v3  ;;  %v64_v7 = vld [vmem:[%s2172_s0 + $0x180] sm:$0xff]  ;;  %v66_v10 = vld [vmem:[%s2172_s0 + $0x190] sm:$0xff]  ;;  %v121_v13 = vld [vmem:[%s2172_s0 + $0x348] sm:$0x1] }
  0x20   :  { %675 = vmatprep.mubr.f32.mxu1 %v1598_v3  ;;  %1520 = vmatprep.subr.msk.bf16.mxu0 %vm1654_vm2, %v1518_v33  ;;  %v1556_v14 = vpack.c.bf16 %v64_v7, %v36_v6  ;;  %v95_v15 = vld [vmem:[%s2172_s0 + $0x278] sm:$0xff]  ;;  %v1566_v18 = vpack.c.bf16 %v66_v10, %v38_v9  ;;  %v92_v19 = vld [vmem:[%s2172_s0 + $0x260] sm:$0xff]  ;;  %v1558_v21 = vpack.c.bf16 %v121_v13, %v93_v12  ;;  %v94_v22 = vld [vmem:[%s2172_s0 + $0x270] sm:$0xff] }
  0x21   :  { %1417 = vmatmul.mubr.msk.f32.gmra.mrb[10].mxu0 %vm128_vm3, %v1725_v43  ;;  %1530 = vmatprep.subr.msk.bf16.mxu1 %vm1654_vm2, %v1528_v37  ;;  %v123_v17 = vld [vmem:[%s2172_s0 + $0x358] sm:$0x1]  ;;  %v120_v20 = vld [vmem:[%s2172_s0 + $0x340] sm:$0x1]  ;;  %v122_v23 = vld [vmem:[%s2172_s0 + $0x350] sm:$0x1] }
  0x22   :  { %1421 = vmatmul.mubr.msk.f32.gmra.mrb[10].mxu1 %vm128_vm3, %v1725_v43  ;;  %1523 = vmatpush1.bf16.msk.msra.mxu0 %vm1654_vm2, %v1521_v40  ;;  %v1568_v24 = vpack.c.bf16 %v123_v17, %v95_v15  ;;  %v41_v25 = vld [vmem:[%s2172_s0 + $0xc8] sm:$0xff]  ;;  %v1561_v27 = vpack.c.bf16 %v120_v20, %v92_v19  ;;  %v43_v28 = vld [vmem:[%s2172_s0 + $0xd8] sm:$0xff]  ;;  %v1571_v30 = vpack.c.bf16 %v122_v23, %v94_v22  ;;  %v40_v31 = vld [vmem:[%s2172_s0 + $0xc0] sm:$0xff] }
  0x23   :  { %1533 = vmatpush1.bf16.msk.msra.mxu1 %vm1654_vm2, %v1531_v44  ;;  %746 = vmatprep.mubr.f32.mxu0 %v1598_v3  ;;  %v69_v26 = vld [vmem:[%s2172_s0 + $0x1a8] sm:$0xff]  ;;  %v71_v29 = vld [vmem:[%s2172_s0 + $0x1b8] sm:$0xff]  ;;  %v68_v32 = vld [vmem:[%s2172_s0 + $0x1a0] sm:$0xff] }
  0x24   :  { %823 = vmatprep.mubr.f32.mxu1 %v1598_v3  ;;  %1535 = vmatprep.subr.bf16.mxu0 %v1534_v47  ;;  %v1574_v33 = vpack.c.bf16 %v69_v26, %v41_v25  ;;  %v42_v35 = vld [vmem:[%s2172_s0 + $0xd0] sm:$0xff]  ;;  %v1584_v37 = vpack.c.bf16 %v71_v29, %v43_v28  ;;  %v97_v38 = vld [vmem:[%s2172_s0 + $0x288] sm:$0xff]  ;;  %v1576_v40 = vpack.c.bf16 %v68_v32, %v40_v31  ;;  %v99_v41 = vld [vmem:[%s2172_s0 + $0x298] sm:$0xff] }
  0x25   :  { %1424 = vmatmul.mubr.msk.f32.vlgmr.msra.gmra.mrb[12].mxu0 %vm128_vm3, %v1703_v34  ;;  %1545 = vmatprep.subr.bf16.mxu1 %v1544_v50  ;;  %v70_v36 = vld [vmem:[%s2172_s0 + $0x1b0] sm:$0xff]  ;;  %v125_v39 = vld [vmem:[%s2172_s0 + $0x368] sm:$0x1]  ;;  %v127_v42 = vld [vmem:[%s2172_s0 + $0x378] sm:$0x1] }
  0x26   :  { %1428 = vmatmul.mubr.msk.f32.vlgmr.msra.gmra.mrb[12].mxu1 %vm128_vm3, %v1703_v34  ;;  %1537 = vmatpush1.bf16.msra.mxu0 %v1536_v53  ;;  %v1586_v44 = vpack.c.bf16 %v70_v36, %v42_v35  ;;  %v96_v45 = vld [vmem:[%s2172_s0 + $0x280] sm:$0xff]  ;;  %v1578_v47 = vpack.c.bf16 %v125_v39, %v97_v38  ;;  %v98_v48 = vld [vmem:[%s2172_s0 + $0x290] sm:$0xff]  ;;  %v1588_v50 = vpack.c.bf16 %v127_v42, %v99_v41  ;;  %v1341_v54 = vld [vmem:[%s2174_s2 + $0x8] sm:$0xff] }
  0x27   :  { %1547 = vmatpush1.bf16.msra.mxu1 %v1546_v56  ;;  %752 = vmatprep.mubr.f32.mxu0 %v1598_v3  ;;  %v124_v46 = vld [vmem:[%s2172_s0 + $0x360] sm:$0x1]  ;;  %v126_v49 = vld [vmem:[%s2172_s0 + $0x370] sm:$0x1] }
  0x28   :  { %829 = vmatprep.mubr.f32.mxu1 %v1598_v3  ;;  %1540 = vmatprep.subr.msk.bf16.mxu0 %vm1654_vm2, %v1538_v59  ;;  %v1581_v51 = vpack.c.bf16 %v124_v46, %v96_v45  ;;  %v1591_v52 = vpack.c.bf16 %v126_v49, %v98_v48  ;;  %v1340_v53 = vld [vmem:[%s2174_s2] sm:$0xff] }
  0x29   :  { %1425 = vmatmul.mubr.msk.f32.gmra.mrb[14].mxu0 %vm128_vm3, %v1725_v43  ;;  %1550 = vmatprep.subr.msk.bf16.mxu1 %vm1654_vm2, %v1548_v62 }
  0x2a   :  { %1429 = vmatmul.mubr.msk.f32.gmra.mrb[14].mxu1 %vm128_vm3, %v1725_v43  ;;  %1543 = vmatpush1.bf16.msk.msra.mxu0 %vm1654_vm2, %v1541_v1 }
  0x2b   :  { %1553 = vmatpush1.bf16.msk.msra.mxu1 %vm1654_vm2, %v1551_v5  ;;  %900 = vmatprep.mubr.f32.mxu0 %v1598_v3 }
  0x2c   :  { %977 = vmatprep.mubr.f32.mxu1 %v1598_v3  ;;  %1555 = vmatprep.subr.bf16.mxu0 %v1554_v8 }
  0x2d   :  { %1432 = vmatmul.mubr.msk.f32.vlgmr.msra.gmra.mrb[16].mxu0 %vm128_vm3, %v1703_v34  ;;  %1565 = vmatprep.subr.bf16.mxu1 %v1564_v11 }
  0x2e   :  { %1436 = vmatmul.mubr.msk.f32.vlgmr.msra.gmra.mrb[16].mxu1 %vm128_vm3, %v1703_v34  ;;  %1557 = vmatpush1.bf16.msra.mxu0 %v1556_v14 }
  0x2f   :  { %1567 = vmatpush1.bf16.msra.mxu1 %v1566_v18  ;;  %906 = vmatprep.mubr.f32.mxu0 %v1598_v3 }
  0x30   :  { %983 = vmatprep.mubr.f32.mxu1 %v1598_v3  ;;  %1560 = vmatprep.subr.msk.bf16.mxu0 %vm1654_vm2, %v1558_v21 }
  0x31   :  { %1433 = vmatmul.mubr.msk.f32.gmra.mrb[18].mxu0 %vm128_vm3, %v1725_v43  ;;  %1570 = vmatprep.subr.msk.bf16.mxu1 %vm1654_vm2, %v1568_v24 }
  0x32   :  { %1437 = vmatmul.mubr.msk.f32.gmra.mrb[18].mxu1 %vm128_vm3, %v1725_v43  ;;  %1563 = vmatpush1.bf16.msk.msra.mxu0 %vm1654_vm2, %v1561_v27 }
  0x33   :  { %1573 = vmatpush1.bf16.msk.msra.mxu1 %vm1654_vm2, %v1571_v30  ;;  %1054 = vmatprep.mubr.f32.mxu0 %v1598_v3 }
  0x34   :  { %1131 = vmatprep.mubr.f32.mxu1 %v1598_v3  ;;  %1575 = vmatprep.subr.bf16.mxu0 %v1574_v33 }
  0x35   :  { %1440 = vmatmul.mubr.msk.f32.vlgmr.msra.gmra.mrb[20].mxu0 %vm128_vm3, %v1703_v34  ;;  %1585 = vmatprep.subr.bf16.mxu1 %v1584_v37 }
  0x36   :  { %1444 = vmatmul.mubr.msk.f32.vlgmr.msra.gmra.mrb[20].mxu1 %vm128_vm3, %v1703_v34  ;;  %1577 = vmatpush1.bf16.msra.mxu0 %v1576_v40 }
  0x37   :  { %1587 = vmatpush1.bf16.msra.mxu1 %v1586_v44  ;;  %1060 = vmatprep.mubr.f32.mxu0 %v1598_v3 }
  0x38   :  { %1137 = vmatprep.mubr.f32.mxu1 %v1598_v3  ;;  %1580 = vmatprep.subr.msk.bf16.mxu0 %vm1654_vm2, %v1578_v47 }
  0x39   :  { %1441 = vmatmul.mubr.msk.f32.gmra.mrb[22].mxu0 %vm128_vm3, %v1725_v43  ;;  %1590 = vmatprep.subr.msk.bf16.mxu1 %vm1654_vm2, %v1588_v50 }
  0x3a   :  { %1445 = vmatmul.mubr.msk.f32.gmra.mrb[22].mxu1 %vm128_vm3, %v1725_v43  ;;  %1583 = vmatpush1.bf16.msk.msra.mxu0 %vm1654_vm2, %v1581_v51 }
  0x3b   :  { %1593 = vmatpush1.bf16.msk.msra.mxu1 %vm1654_vm2, %v1591_v52  ;;  %1208 = vmatprep.mubr.f32.mxu0 %v1598_v3 }
  0x3c   :  { %1285 = vmatprep.mubr.f32.mxu1 %v1598_v3  ;;  %1344 = vperm.xlu0 %1597, %v1340_v53  }
  0x3d   :  { %1448 = vmatmul.mubr.msk.f32.vlgmr.msra.gmra.mrb[24].mxu0 %vm128_vm3, %v1703_v34 }
  0x3e   :  { %1452 = vmatmul.mubr.msk.f32.vlgmr.msra.gmra.mrb[24].mxu1 %vm128_vm3, %v1703_v34  ;;  %1214 = vmatprep.mubr.f32.mxu0 %v1598_v3 }
  0x3f   :  { %1291 = vmatprep.mubr.f32.mxu1 %v1598_v3 }
  0x40   :  { %1349 = vperm.xlu0 %1597, %v1341_v54  }
  0x41   :  { %1449 = vmatmul.mubr.msk.f32.gmra.mrb[26].mxu0 %vm128_vm3, %v1725_v43 }
  0x42   :  { %1453 = vmatmul.mubr.msk.f32.gmra.mrb[26].mxu1 %vm128_vm3, %v1725_v43 }
  0xe0   :  { %v286_v16 = vpop.f32.mrb[0].mxu0 }
  0xe1   :  { %v363_v55 = vpop.f32.mrb[0].mxu1  ;;  %v288_v56 = vpop.f32.mrb[1].mxu0 }
  0xe2   :  { %v365_v57 = vpop.f32.mrb[1].mxu1 }
  0xe4   :  { %v292_v58 = vpop.f32.mrb[2].mxu0 }
  0xe5   :  { %v369_v59 = vpop.f32.mrb[2].mxu1  ;;  %v294_v60 = vpop.f32.mrb[3].mxu0 }
  0xe6   :  { %v371_v61 = vpop.f32.mrb[3].mxu1 }
  0xe8   :  { %v440_v34 = vpop.f32.mrb[4].mxu0 }
  0xe9   :  { %v517_v62 = vpop.f32.mrb[4].mxu1  ;;  %v442_v63 = vpop.f32.mrb[5].mxu0 }
  0xea   :  { %v519_v0 = vpop.f32.mrb[5].mxu1 }
  0xeb   :  { %v1298_v3 = vmax.f32 %v286_v16, %v519_v0 }
  0xec   :  { %v446_v1 = vpop.f32.mrb[6].mxu0 }
  0xed   :  { %v2118_v2 = vpop.f32.mrb[6].mxu1  ;;  %v448_v4 = vpop.f32.mrb[7].mxu0 }
  0xee   :  { %v525_v5 = vpop.f32.mrb[7].mxu1 }
  0xef   :  { %v1305_v6 = vmax.f32 %v292_v58, %v525_v5 }
  0xf0   :  { %v594_v43 = vpop.f32.mrb[8].mxu0 }
  0xf1   :  { %v1299_v7 = vmax.f32 %v288_v56, %v594_v43  ;;  %v671_v8 = vpop.f32.mrb[8].mxu1  ;;  %v596_v9 = vpop.f32.mrb[9].mxu0 }
  0xf2   :  { %v1301_v10 = vmax.f32 %v365_v57, %v671_v8  ;;  %v1300_v11 = vmax.f32 %v363_v55, %v596_v9  ;;  %v673_v12 = vpop.f32.mrb[9].mxu1  ;;  %v1345_v55 = vpop.permute.xlu0 %1344 }
  0xf3   :  { %v1302_v13 = vmax.f32 %v440_v34, %v673_v12 }
  0xf4   :  { %v600_v14 = vpop.f32.mrb[10].mxu0 }
  0xf5   :  { %v1306_v15 = vmax.f32 %v294_v60, %v600_v14  ;;  %v677_v17 = vpop.f32.mrb[10].mxu1  ;;  %v602_v18 = vpop.f32.mrb[11].mxu0 }
  0xf6   :  { %v1308_v19 = vmax.f32 %v371_v61, %v677_v17  ;;  %v1307_v20 = vmax.f32 %v369_v59, %v602_v18  ;;  %v679_v21 = vpop.f32.mrb[11].mxu1 }
  0xf7   :  { %v1309_v22 = vmax.f32 %v446_v1, %v679_v21 }
  0xf8   :  { %v748_v23 = vpop.f32.mrb[12].mxu0 }
  0xf9   :  { %v1303_v24 = vmax.f32 %v442_v63, %v748_v23  ;;  %v825_v25 = vpop.f32.mrb[12].mxu1  ;;  %v750_v26 = vpop.f32.mrb[13].mxu0 }
  0xfa   :  { %v1312_v27 = vmax.f32 %v1298_v3, %v825_v25  ;;  %v1304_v28 = vmax.f32 %v517_v62, %v750_v26  ;;  %v827_v29 = vpop.f32.mrb[13].mxu1 }
  0xfb   :  { %v1313_v30 = vmax.f32 %v1299_v7, %v827_v29 }
  0xfc   :  { %v754_v31 = vpop.f32.mrb[14].mxu0 }
  0xfd   :  { %v1310_v32 = vmax.f32 %v448_v4, %v754_v31  ;;  %v831_v33 = vpop.f32.mrb[14].mxu1  ;;  %v756_v35 = vpop.f32.mrb[15].mxu0 }
  0xfe   :  { %v1319_v36 = vmax.f32 %v1305_v6, %v831_v33  ;;  %v1311_v37 = vmax.f32 %v2118_v2, %v756_v35  ;;  %v833_v38 = vpop.f32.mrb[15].mxu1  ;;  %v1350_v2 = vpop.permute.xlu0 %1349 }
  0xff   :  { %v1320_v39 = vmax.f32 %v1306_v15, %v833_v38 }
 0x100   :  { %v902_v40 = vpop.f32.mrb[16].mxu0 }
 0x101   :  { %v1314_v41 = vmax.f32 %v1300_v11, %v902_v40  ;;  %v979_v42 = vpop.f32.mrb[16].mxu1  ;;  %v904_v44 = vpop.f32.mrb[17].mxu0 }
 0x102   :  { %v1316_v45 = vmax.f32 %v1302_v13, %v979_v42  ;;  %v1315_v46 = vmax.f32 %v1301_v10, %v904_v44  ;;  %v981_v47 = vpop.f32.mrb[17].mxu1 }
 0x103   :  { %v1317_v48 = vmax.f32 %v1303_v24, %v981_v47 }
 0x104   :  { %v908_v49 = vpop.f32.mrb[18].mxu0 }
 0x105   :  { %v1321_v50 = vmax.f32 %v1307_v20, %v908_v49  ;;  %v985_v51 = vpop.f32.mrb[18].mxu1  ;;  %v910_v52 = vpop.f32.mrb[19].mxu0 }
 0x106   :  { %v2121_v53 = vmax.f32 %v1309_v22, %v985_v51  ;;  %v2123_v54 = vmax.f32 %v1308_v19, %v910_v52  ;;  %v987_v16 = vpop.f32.mrb[19].mxu1 }
 0x107   :  { %v2125_v56 = vmax.f32 %v1310_v32, %v987_v16 }
 0x108   :  { %v1056_v57 = vpop.f32.mrb[20].mxu0 }
 0x109   :  { %v1318_v58 = vmax.f32 %v1304_v28, %v1056_v57  ;;  %v1133_v59 = vpop.f32.mrb[20].mxu1  ;;  %v1058_v60 = vpop.f32.mrb[21].mxu0 }
 0x10a   :  { %v1327_v61 = vmax.f32 %v1313_v30, %v1133_v59  ;;  %v1326_v34 = vmax.f32 %v1312_v27, %v1058_v60  ;;  %v1135_v62 = vpop.f32.mrb[21].mxu1 }
 0x10b   :  { %v1328_v63 = vmax.f32 %v1314_v41, %v1135_v62 }
 0x10c   :  { %v1352_v0 = vadd.f32 %v1345_v55, %v1326_v34  ;;  %v1353_v3 = vadd.f32 %v1345_v55, %v1327_v61  ;;  %v1062_v1 = vpop.f32.mrb[22].mxu0 }
 0x10d   :  { %v1354_v4 = vadd.f32 %v1345_v55, %v1328_v63  ;;  %v1325_v5 = vmax.f32 %v1311_v37, %v1062_v1  ;;  %v1139_v6 = vpop.f32.mrb[22].mxu1  ;;  %v1064_v43 = vpop.f32.mrb[23].mxu0 }
 0x10e   :  { %v1366_v7 = vmax.f32 %v1352_v0, 0.0  ;;  %v1367_v8 = vmax.f32 %v1353_v3, 0.0  ;;  %v1334_v9 = vmax.f32 %v1320_v39, %v1139_v6  ;;  %v1333_v10 = vmax.f32 %v1319_v36, %v1064_v43  ;;  %v1141_v11 = vpop.f32.mrb[23].mxu1 }
 0x10f   :  { %v1368_v12 = vmax.f32 %v1354_v4, 0.0  ;;  %v1335_v13 = vmax.f32 %v1321_v50, %v1141_v11 }
 0x110   :  { %1380 = vst [vmem:[%s2175_s3] sm:$0xff] %v1366_v7  ;;  %1381 = vst [vmem:[%s2175_s3 + $0x8] sm:$0xff] %v1367_v8  ;;  %v1359_v14 = vadd.f32 %v1350_v2, %v1333_v10  ;;  %v1360_v15 = vadd.f32 %v1350_v2, %v1334_v9  ;;  %v1210_v17 = vpop.f32.mrb[24].mxu0 }
 0x111   :  { %1382 = vst [vmem:[%s2175_s3 + $0x10] sm:$0xff] %v1368_v12  ;;  %v1361_v18 = vadd.f32 %v1350_v2, %v1335_v13  ;;  %v1329_v19 = vmax.f32 %v1315_v46, %v1210_v17  ;;  %v1287_v20 = vpop.f32.mrb[24].mxu1  ;;  %v1212_v21 = vpop.f32.mrb[25].mxu0 }
 0x112   :  { %v1373_v22 = vmax.f32 %v1359_v14, 0.0  ;;  %v1374_v23 = vmax.f32 %v1360_v15, 0.0  ;;  %v1331_v24 = vmax.f32 %v1317_v48, %v1287_v20  ;;  %v1330_v25 = vmax.f32 %v1316_v45, %v1212_v21  ;;  %v1289_v26 = vpop.f32.mrb[25].mxu1 }
 0x113   :  { %v1375_v27 = vmax.f32 %v1361_v18, 0.0  ;;  %v1355_v28 = vadd.f32 %v1345_v55, %v1329_v19  ;;  %v1332_v29 = vmax.f32 %v1318_v58, %v1289_v26 }
 0x114   :  { %1387 = vst [vmem:[%s2175_s3 + $0x38] sm:$0xff] %v1373_v22  ;;  %1388 = vst [vmem:[%s2175_s3 + $0x40] sm:$0xff] %v1374_v23  ;;  %v1357_v30 = vadd.f32 %v1345_v55, %v1331_v24  ;;  %v1356_v31 = vadd.f32 %v1345_v55, %v1330_v25  ;;  %v1216_v32 = vpop.f32.mrb[26].mxu0 }
 0x115   :  { %1389 = vst [vmem:[%s2175_s3 + $0x48] sm:$0xff] %v1375_v27  ;;  %v1369_v33 = vmax.f32 %v1355_v28, 0.0  ;;  %v1358_v35 = vadd.f32 %v1345_v55, %v1332_v29  ;;  %v1336_v36 = vmax.f32 %v2123_v54, %v1216_v32  ;;  %v1293_v37 = vpop.f32.mrb[26].mxu1  ;;  %v1218_v38 = vpop.f32.mrb[27].mxu0 }
 0x116   :  { %v1371_v39 = vmax.f32 %v1357_v30, 0.0  ;;  %v1370_v40 = vmax.f32 %v1356_v31, 0.0  ;;  %v1338_v41 = vmax.f32 %v2125_v56, %v1293_v37  ;;  %v1337_v42 = vmax.f32 %v2121_v53, %v1218_v38  ;;  %v1295_v44 = vpop.f32.mrb[27].mxu1 }
 0x117   :  { %1383 = vst [vmem:[%s2175_s3 + $0x18] sm:$0xff] %v1369_v33  ;;  %v1372_v45 = vmax.f32 %v1358_v35, 0.0  ;;  %v1362_v46 = vadd.f32 %v1350_v2, %v1336_v36  ;;  %v1339_v47 = vmax.f32 %v1325_v5, %v1295_v44 }
 0x118   :  { %1385 = vst [vmem:[%s2175_s3 + $0x28] sm:$0xff] %v1371_v39  ;;  %1384 = vst [vmem:[%s2175_s3 + $0x20] sm:$0xff] %v1370_v40  ;;  %v1364_v48 = vadd.f32 %v1350_v2, %v1338_v41  ;;  %v1363_v49 = vadd.f32 %v1350_v2, %v1337_v42 }
 0x119   :  { %1386 = vst [vmem:[%s2175_s3 + $0x30] sm:$0xff] %v1372_v45  ;;  %v1376_v50 = vmax.f32 %v1362_v46, 0.0  ;;  %v1365_v51 = vadd.f32 %v1350_v2, %v1339_v47 }
 0x11a   :  { %v1378_v52 = vmax.f32 %v1364_v48, 0.0  ;;  %v1377_v53 = vmax.f32 %v1363_v49, 0.0 }
 0x11b   :  { %1390 = vst [vmem:[%s2175_s3 + $0x50] sm:$0xff] %v1376_v50  ;;  %v1379_v54 = vmax.f32 %v1365_v51, 0.0 }
 0x11c   :  { %1392 = vst [vmem:[%s2175_s3 + $0x60] sm:$0xff] %v1378_v52  ;;  %1391 = vst [vmem:[%s2175_s3 + $0x58] sm:$0xff] %v1377_v53 }
 0x11d   :  { %1393 = vst [vmem:[%s2175_s3 + $0x68] sm:$0xff] %v1379_v54 }

// kernel: cnn_forward.3
= control target key start
LH: loop header
LB: loop body
LE: loop exit
PB: predicated region body
PF: predicated region fallthrough
CT: control target
= control target key end

     0   :  { %v3672_v3 = vmov 0.0|0.0   ;;  %s4807_s0 = inlined_call_operand.vmem [shape: f32[224,400], index: 0, kind: input, shape index: {}]   ;;  %s4808_s1 = inlined_call_operand.vmem [shape: f32[400,32], index: 1, kind: input, shape index: {}]   ;;  %s4809_s2 = inlined_call_operand.vmem [shape: f32[1,32], index: 2, kind: input, shape index: {}]   ;;  %s4810_s3 = inlined_call_operand.vmem [shape: f32[800,100], index: 3, kind: input, shape index: {}]   ;;  %s4811_s4 = inlined_call_operand.vmem [shape: f32[1,100], index: 4, kind: input, shape index: {}]   ;;  %s4812_s5 = inlined_call_operand.vmem [shape: f32[100,2], index: 5, kind: input, shape index: {}]   ;;  %s4813_s6 = inlined_call_operand.vmem [shape: f32[1,2], index: 6, kind: input, shape index: {}]   ;;  %s4814_s7 = inlined_call_operand.hbm [shape: f32[2,2], index: 7, kind: output, shape index: {}]  }
   0x1   :  { %v139_v0 = vld [vmem:[%s4808_s1] sm:$0xff]  ;;  %v140_v1 = vld [vmem:[%s4808_s1 + $0x8] sm:$0xff]  ;;  %v141_v2 = vld [vmem:[%s4808_s1 + $0x10] sm:$0xff]  ;;  %3330 = vmatprep.subr.bf16.mxu0 %v3672_v3  ;;  %3573 = vmatprep.subr.bf16.mxu1 %v3672_v3 }
   0x2   :  { %v3331_v4 = vpack.c.bf16 %v140_v1, %v139_v0  ;;  %v142_v5 = vld [vmem:[%s4808_s1 + $0x18] sm:$0xff]  ;;  %v143_v7 = vld [vmem:[%s4808_s1 + $0x20] sm:$0xff]  ;;  %v144_v8 = vld [vmem:[%s4808_s1 + $0x28] sm:$0xff] }
   0x3   :  { %v3334_v6 = vpack.c.bf16 %v142_v5, %v141_v2  ;;  %v3337_v9 = vpack.c.bf16 %v144_v8, %v143_v7  ;;  %v145_v10 = vld [vmem:[%s4808_s1 + $0x30] sm:$0xff]  ;;  %v146_v11 = vld [vmem:[%s4808_s1 + $0x38] sm:$0xff]  ;;  %v28_v12 = vld [vmem:[%s4807_s0 + $0x8] sm:$0xff] }
   0x4   :  { %3332 = vmatpush1.bf16.msra.mxu0 %v3331_v4  ;;  %v3340_v13 = vpack.c.bf16 %v146_v11, %v145_v10  ;;  %338 = vmatprep.mubr.f32.mxu0 %v28_v12  ;;  %v171_v14 = vld [vmem:[%s4808_s1 + $0x100] sm:$0xff]  ;;  %v172_v15 = vld [vmem:[%s4808_s1 + $0x108] sm:$0xff]  ;;  %v173_v19 = vld [vmem:[%s4808_s1 + $0x110] sm:$0xff] }
   0x5   :  { %3333 = vmatprep.subr.bf16.mxu0 %v3672_v3  ;;  %v147_v16 = vld [vmem:[%s4808_s1 + $0x40] sm:$0xff]  ;;  %v148_v17 = vld [vmem:[%s4808_s1 + $0x48] sm:$0xff]  ;;  %v3760_v18 = vpack.c.bf16 %v172_v15, %v171_v14  ;;  %v174_v20 = vld [vmem:[%s4808_s1 + $0x118] sm:$0xff] }
   0x6   :  { %v3343_v21 = vpack.c.bf16 %v148_v17, %v147_v16  ;;  %v3769_v22 = vpack.c.bf16 %v174_v20, %v173_v19  ;;  %v149_v23 = vld [vmem:[%s4808_s1 + $0x50] sm:$0xff]  ;;  %v150_v24 = vld [vmem:[%s4808_s1 + $0x58] sm:$0xff]  ;;  %v175_v25 = vld [vmem:[%s4808_s1 + $0x120] sm:$0xff] }
   0x7   :  { %3582 = vmatpush1.bf16.msra.mxu1 %v3760_v18  ;;  %v176_v26 = vld [vmem:[%s4808_s1 + $0x128] sm:$0xff]  ;;  %v3346_v28 = vpack.c.bf16 %v150_v24, %v149_v23  ;;  %v177_v29 = vld [vmem:[%s4808_s1 + $0x130] sm:$0xff]  ;;  %v151_v30 = vld [vmem:[%s4808_s1 + $0x60] sm:$0xff] }
   0x8   :  { %3335 = vmatpush1.bf16.msra.mxu0 %v3334_v6  ;;  %3574 = vmatprep.subr.bf16.mxu1 %v3672_v3  ;;  %v3785_v27 = vpack.c.bf16 %v176_v26, %v175_v25  ;;  %v152_v31 = vld [vmem:[%s4808_s1 + $0x68] sm:$0xff]  ;;  %v178_v32 = vld [vmem:[%s4808_s1 + $0x138] sm:$0xff]  ;;  %v179_v35 = vld [vmem:[%s4808_s1 + $0x140] sm:$0xff] }
   0x9   :  { %3336 = vmatprep.subr.bf16.mxu0 %v3672_v3  ;;  %v3802_v33 = vpack.c.bf16 %v178_v32, %v177_v29  ;;  %v3349_v34 = vpack.c.bf16 %v152_v31, %v151_v30  ;;  %v180_v36 = vld [vmem:[%s4808_s1 + $0x148] sm:$0xff]  ;;  %v153_v37 = vld [vmem:[%s4808_s1 + $0x70] sm:$0xff]  ;;  %v154_v38 = vld [vmem:[%s4808_s1 + $0x78] sm:$0xff] }
   0xa   :  { %v3819_v39 = vpack.c.bf16 %v180_v36, %v179_v35  ;;  %v3352_v40 = vpack.c.bf16 %v154_v38, %v153_v37  ;;  %v181_v41 = vld [vmem:[%s4808_s1 + $0x150] sm:$0xff]  ;;  %v182_v42 = vld [vmem:[%s4808_s1 + $0x158] sm:$0xff]  ;;  %v155_v43 = vld [vmem:[%s4808_s1 + $0x80] sm:$0xff] }
   0xb   :  { %3583 = vmatpush1.bf16.msra.mxu1 %v3769_v22  ;;  %v156_v44 = vld [vmem:[%s4808_s1 + $0x88] sm:$0xff]  ;;  %v3836_v45 = vpack.c.bf16 %v182_v42, %v181_v41  ;;  %v183_v47 = vld [vmem:[%s4808_s1 + $0x160] sm:$0xff]  ;;  %v157_v49 = vld [vmem:[%s4808_s1 + $0x90] sm:$0xff] }
   0xc   :  { %3338 = vmatpush1.bf16.msra.mxu0 %v3337_v9  ;;  %3575 = vmatprep.subr.bf16.mxu1 %v3672_v3  ;;  %v3355_v46 = vpack.c.bf16 %v156_v44, %v155_v43  ;;  %v184_v48 = vld [vmem:[%s4808_s1 + $0x168] sm:$0xff]  ;;  %v158_v50 = vld [vmem:[%s4808_s1 + $0x98] sm:$0xff] }
   0xd   :  { %3339 = vmatprep.subr.bf16.mxu0 %v3672_v3 }
   0xf   :  { %3584 = vmatpush1.bf16.msra.mxu1 %v3785_v27 }
  0x10   :  { %3341 = vmatpush1.bf16.msra.mxu0 %v3340_v13  ;;  %3576 = vmatprep.subr.bf16.mxu1 %v3672_v3 }
  0x11   :  { %3342 = vmatprep.subr.bf16.mxu0 %v3672_v3 }
  0x13   :  { %3585 = vmatpush1.bf16.msra.mxu1 %v3802_v33 }
  0x14   :  { %3344 = vmatpush1.bf16.msra.mxu0 %v3343_v21  ;;  %3577 = vmatprep.subr.bf16.mxu1 %v3672_v3 }
  0x15   :  { %3345 = vmatprep.subr.bf16.mxu0 %v3672_v3 }
  0x17   :  { %3586 = vmatpush1.bf16.msra.mxu1 %v3819_v39 }
  0x18   :  { %3347 = vmatpush1.bf16.msra.mxu0 %v3346_v28  ;;  %3578 = vmatprep.subr.bf16.mxu1 %v3672_v3 }
  0x19   :  { %3348 = vmatprep.subr.bf16.mxu0 %v3672_v3 }
  0x1c   :  { %3350 = vmatpush1.bf16.msra.mxu0 %v3349_v34 }
  0x1d   :  { %3351 = vmatprep.subr.bf16.mxu0 %v3672_v3 }
  0x20   :  { %3353 = vmatpush1.bf16.msra.mxu0 %v3352_v40 }
  0x21   :  { %3354 = vmatprep.subr.bf16.mxu0 %v3672_v3 }
  0x22   :  { %12 = vsyncpa [#allocation4], 0  ;;  %v3853_v51 = vpack.c.bf16 %v184_v48, %v183_v47  ;;  %3587 = vmatpush1.bf16.msra.mxu1 %v3836_v45  ;;  %v3358_v52 = vpack.c.bf16 %v158_v50, %v157_v49  ;;  %v185_v53 = vld [vmem:[%s4808_s1 + $0x170] sm:$0xff]  ;;  %v186_v54 = vld [vmem:[%s4808_s1 + $0x178] sm:$0xff]  ;;  %vm189_vm0 = vcmask 130048   ;;  %vm3673_vm1 = vmmov 0  }
  0x23   :  { %3579 = vmatprep.subr.bf16.mxu1 %v3672_v3  ;;  %v159_v55 = vld [vmem:[%s4808_s1 + $0xa0] sm:$0xff]  ;;  %v160_v56 = vld [vmem:[%s4808_s1 + $0xa8] sm:$0xff]  ;;  %v130_v57 = vld [vmem:[%s4807_s0 + $0x338] sm:$0xff]  ;;  %v3874_v58 = vpack.c.bf16 %v186_v54, %v185_v53  ;;  %vm726_vm2 = vcmask 261120   ;;  %vm2739_vm3 = vcmask 1043456   ;;  %vm2735_vm4 = vcmask 818176  }
  0x24   :  { %3356 = vmatpush1.bf16.msra.mxu0 %v3355_v46  ;;  %2854 = vmatprep.mubr.msk.f32.mxu1 %vm189_vm0, %v130_v57  ;;  %v3361_v59 = vpack.c.bf16 %v160_v56, %v159_v55  ;;  %v187_v60 = vld [vmem:[%s4808_s1 + $0x180] sm:$0xff]  ;;  %v188_v61 = vld [vmem:[%s4808_s1 + $0x188] sm:$0xff]  ;;  %v161_v62 = vld [vmem:[%s4808_s1 + $0xb0] sm:$0xff]  ;;  %s3675_s12 = smov [#allocation3]   ;;  %vm2813_vm5 = vcmask 9216  }
  0x25   :  { %3357 = vmatprep.subr.bf16.mxu0 %v3672_v3  ;;  %v162_v63 = vld [vmem:[%s4808_s1 + $0xb8] sm:$0xff]  ;;  %v3892_v0 = vpack.c.bf16 %v188_v61, %v187_v60  ;;  %v163_v2 = vld [vmem:[%s4808_s1 + $0xc0] sm:$0xff]  ;;  %v164_v4 = vld [vmem:[%s4808_s1 + $0xc8] sm:$0xff]  ;;  %s2821_s13 = sshll.u32 %s3675_s12, 4  ;;  %s2822_s13 = int_to_ptr.vmem [resolvable:$true] %s2821_s13 }
  0x26   :  { %3588 = vmatpush1.bf16.msra.mxu1 %v3853_v51  ;;  %v3364_v1 = vpack.c.bf16 %v162_v63, %v161_v62  ;;  %v129_v5 = vld [vmem:[%s4807_s0 + $0x330] sm:$0xff]  ;;  %v3367_v6 = vpack.c.bf16 %v164_v4, %v163_v2  ;;  %v134_v7 = vld [vmem:[%s4807_s0 + $0x358] sm:$0xff]  ;;  %v167_v13 = vld [vmem:[%s4808_s1 + $0xe0] sm:$0xff]  ;;  %s3648_s14 = scalar_lea.vmem %s2822_s13, 32  ;;  %p3653_p1 = scmp.lt.s32.totalorder %s2822_s13, %s2822_s13 }
  0x27   :  { %3580 = vmatprep.subr.bf16.mxu1 %v3672_v3  ;;  %v165_v8 = vld [vmem:[%s4808_s1 + $0xd0] sm:$0xff]  ;;  %v166_v9 = vld [vmem:[%s4808_s1 + $0xd8] sm:$0xff]  ;;  %v168_v14 = vld [vmem:[%s4808_s1 + $0xe8] sm:$0xff]  ;;  %p3649_p0 = scmp.ne.s32.totalorder %s2822_s13, %s3648_s14  ;;  %p3654_p2 = scmp.lt.s32.totalorder %s3648_s14, %s3648_s14 }
  0x28   :  { %3359 = vmatpush1.bf16.msra.mxu0 %v3358_v52  ;;  %v133_v10 = vld [vmem:[%s4807_s0 + $0x350] sm:$0xff]  ;;  %v3370_v11 = vpack.c.bf16 %v166_v9, %v165_v8  ;;  %v138_v12 = vld [vmem:[%s4807_s0 + $0x378] sm:$0xff]  ;;  %v3373_v16 = vpack.c.bf16 %v168_v14, %v167_v13  ;;  %v27_v21 = vld [vmem:[%s4807_s0] sm:$0xff] }
  0x29   :  { %3360 = vmatprep.subr.bf16.mxu0 %v3672_v3  ;;  %v137_v15 = vld [vmem:[%s4807_s0 + $0x370] sm:$0xff]  ;;  %v170_v19 = vld [vmem:[%s4808_s1 + $0xf8] sm:$0xff]  ;;  %v32_v23 = vld [vmem:[%s4807_s0 + $0x28] sm:$0xff]  ;;  %p3655_p3 = por %p3654_p2, %p3653_p1 }
  0x2a   :  { %3589 = vmatpush1.bf16.msra.mxu1 %v3874_v58  ;;  %v169_v17 = vld [vmem:[%s4808_s1 + $0xf0] sm:$0xff]  ;;  %v31_v24 = vld [vmem:[%s4807_s0 + $0x20] sm:$0xff]  ;;  %v36_v25 = vld [vmem:[%s4807_s0 + $0x48] sm:$0xff] }
  0x2b   :  { %3581 = vmatprep.subr.bf16.mxu1 %v3672_v3  ;;  %v3376_v20 = vpack.c.bf16 %v170_v19, %v169_v17  ;;  %v35_v26 = vld [vmem:[%s4807_s0 + $0x40] sm:$0xff]  ;;  %v44_v29 = vld [vmem:[%s4807_s0 + $0x88] sm:$0xff]  ;;  %v29_v13 = vld [vmem:[%s4807_s0 + $0x10] sm:$0xff]  ;;  %p3656_p4 = pnand %p3655_p3, %p3649_p0 }
  0x2c   :  { %3362 = vmatpush1.bf16.msra.mxu0 %v3361_v59  ;;  %v39_v28 = vld [vmem:[%s4807_s0 + $0x60] sm:$0xff]  ;;  %v48_v30 = vld [vmem:[%s4807_s0 + $0xa8] sm:$0xff]  ;;  %v34_v14 = vld [vmem:[%s4807_s0 + $0x38] sm:$0xff] }
  0x2d   :  { %3363 = vmatprep.subr.bf16.mxu0 %v3672_v3  ;;  %v52_v31 = vld [vmem:[%s4807_s0 + $0xc8] sm:$0xff]  ;;  %v51_v32 = vld [vmem:[%s4807_s0 + $0xc0] sm:$0xff]  ;;  %v37_v17 = vld [vmem:[%s4807_s0 + $0x50] sm:$0xff] }
  0x2e   :  { %3590 = vmatpush1.bf16.msra.mxu1 %v3892_v0  ;;  %v55_v34 = vld [vmem:[%s4807_s0 + $0xe0] sm:$0xff]  ;;  %v60_v35 = vld [vmem:[%s4807_s0 + $0x108] sm:$0xff]  ;;  %v42_v19 = vld [vmem:[%s4807_s0 + $0x78] sm:$0xff] }
  0x2f   :  { %3405 = vmatprep.subr.bf16.mxu1 %v3672_v3  ;;  %v59_v36 = vld [vmem:[%s4807_s0 + $0x100] sm:$0xff]  ;;  %v64_v37 = vld [vmem:[%s4807_s0 + $0x128] sm:$0xff] }
  0x30   :  { %3365 = vmatpush1.bf16.msra.mxu0 %v3364_v1  ;;  %v63_v38 = vld [vmem:[%s4807_s0 + $0x120] sm:$0xff]  ;;  %v72_v41 = vld [vmem:[%s4807_s0 + $0x168] sm:$0xff] }
  0x31   :  { %3366 = vmatprep.subr.bf16.mxu0 %v3672_v3  ;;  %669 = vmatmul.mubr.f32.vlgmr.msra.gmra.mrb[0].mxu1 %v129_v5  ;;  %v67_v40 = vld [vmem:[%s4807_s0 + $0x140] sm:$0xff]  ;;  %v76_v43 = vld [vmem:[%s4807_s0 + $0x188] sm:$0xff] }
  0x32   :  { %2855 = vmatprep.mubr.msk.f32.mxu1 %vm189_vm0, %v134_v7  ;;  %v71_v42 = vld [vmem:[%s4807_s0 + $0x160] sm:$0xff]  ;;  %v84_v47 = vld [vmem:[%s4807_s0 + $0x1c8] sm:$0xff] }
  0x33   :  { %v75_v44 = vld [vmem:[%s4807_s0 + $0x180] sm:$0xff]  ;;  %v88_v49 = vld [vmem:[%s4807_s0 + $0x1e8] sm:$0xff] }
  0x34   :  { %3368 = vmatpush1.bf16.msra.mxu0 %v3367_v6  ;;  %v79_v46 = vld [vmem:[%s4807_s0 + $0x1a0] sm:$0xff]  ;;  %v96_v53 = vld [vmem:[%s4807_s0 + $0x228] sm:$0xff] }
  0x35   :  { %3369 = vmatprep.subr.bf16.mxu0 %v3672_v3  ;;  %674 = vmatmul.mubr.f32.gmra.mrb[2].mxu1 %v133_v10  ;;  %v83_v48 = vld [vmem:[%s4807_s0 + $0x1c0] sm:$0xff]  ;;  %v100_v55 = vld [vmem:[%s4807_s0 + $0x248] sm:$0xff] }
  0x36   :  { %2856 = vmatprep.mubr.msk.f32.mxu1 %vm189_vm0, %v138_v12  ;;  %v87_v50 = vld [vmem:[%s4807_s0 + $0x1e0] sm:$0xff]  ;;  %v104_v57 = vld [vmem:[%s4807_s0 + $0x268] sm:$0xff]  ;;  %v30_v12 = vld [vmem:[%s4807_s0 + $0x18] sm:$0xff] }
  0x37   :  { %v91_v52 = vld [vmem:[%s4807_s0 + $0x200] sm:$0xff]  ;;  %v108_v59 = vld [vmem:[%s4807_s0 + $0x288] sm:$0xff] }
  0x38   :  { %3371 = vmatpush1.bf16.msra.mxu0 %v3370_v11  ;;  %v95_v54 = vld [vmem:[%s4807_s0 + $0x220] sm:$0xff]  ;;  %v112_v61 = vld [vmem:[%s4807_s0 + $0x2a8] sm:$0xff] }
  0x39   :  { %3372 = vmatprep.subr.bf16.mxu0 %v3672_v3  ;;  %679 = vmatmul.mubr.f32.gmra.mrb[4].mxu1 %v137_v15  ;;  %v99_v56 = vld [vmem:[%s4807_s0 + $0x240] sm:$0xff]  ;;  %v116_v63 = vld [vmem:[%s4807_s0 + $0x2c8] sm:$0xff]  ;;  %v33_v15 = vld [vmem:[%s4807_s0 + $0x30] sm:$0xff] }
  0x3a   :  { %v107_v60 = vld [vmem:[%s4807_s0 + $0x280] sm:$0xff]  ;;  %v120_v1 = vld [vmem:[%s4807_s0 + $0x2e8] sm:$0xff] }
  0x3b   :  { %v111_v62 = vld [vmem:[%s4807_s0 + $0x2a0] sm:$0xff]  ;;  %v124_v4 = vld [vmem:[%s4807_s0 + $0x308] sm:$0xff] }
  0x3c   :  { %3374 = vmatpush1.bf16.msra.mxu0 %v3373_v16  ;;  %v119_v2 = vld [vmem:[%s4807_s0 + $0x2e0] sm:$0xff]  ;;  %v128_v6 = vld [vmem:[%s4807_s0 + $0x328] sm:$0xff]  ;;  %v38_v16 = vld [vmem:[%s4807_s0 + $0x58] sm:$0xff] }
  0x3d   :  { %3375 = vmatprep.subr.bf16.mxu0 %v3672_v3  ;;  %v123_v5 = vld [vmem:[%s4807_s0 + $0x300] sm:$0xff]  ;;  %v132_v8 = vld [vmem:[%s4807_s0 + $0x348] sm:$0xff] }
  0x3e   :  { %v127_v7 = vld [vmem:[%s4807_s0 + $0x320] sm:$0xff]  ;;  %v136_v10 = vld [vmem:[%s4807_s0 + $0x368] sm:$0xff] }
  0x3f   :  { %v131_v9 = vld [vmem:[%s4807_s0 + $0x340] sm:$0xff] }
  0x40   :  { %3377 = vmatpush1.bf16.msra.mxu0 %v3376_v20  ;;  %v135_v11 = vld [vmem:[%s4807_s0 + $0x360] sm:$0xff]  ;;  %v41_v20 = vld [vmem:[%s4807_s0 + $0x70] sm:$0xff] }
  0x41   :  { %3378 = vmatprep.subr.bf16.mxu0 %v3672_v3 }
  0x43   :  { %339 = vmatmul.mubr.f32.vlgmr.msra.gmra.mrb[0].mxu0 %v27_v21  ;;  %v46_v21 = vld [vmem:[%s4807_s0 + $0x98] sm:$0xff] }
  0x44   :  { %3380 = vmatpush1.bf16.msra.mxu0 %v3760_v18  ;;  %343 = vmatprep.mubr.f32.mxu0 %v32_v23  ;;  %v40_v18 = vld [vmem:[%s4807_s0 + $0x68] sm:$0xff]  ;;  %v45_v23 = vld [vmem:[%s4807_s0 + $0x90] sm:$0xff] }
  0x45   :  { %3381 = vmatprep.subr.bf16.mxu0 %v3672_v3 }
  0x47   :  { %344 = vmatmul.mubr.f32.gmra.mrb[2].mxu0 %v31_v24  ;;  %v50_v24 = vld [vmem:[%s4807_s0 + $0xb8] sm:$0xff] }
  0x48   :  { %348 = vmatprep.mubr.f32.mxu0 %v36_v25  ;;  %3383 = vmatpush1.bf16.msra.mxu0 %v3769_v22  ;;  %v43_v22 = vld [vmem:[%s4807_s0 + $0x80] sm:$0xff]  ;;  %v49_v25 = vld [vmem:[%s4807_s0 + $0xb0] sm:$0xff] }
  0x49   :  { %3384 = vmatprep.subr.bf16.mxu0 %v3672_v3 }
  0x4b   :  { %349 = vmatmul.mubr.f32.gmra.mrb[4].mxu0 %v35_v26  ;;  %v54_v26 = vld [vmem:[%s4807_s0 + $0xd8] sm:$0xff] }
  0x4c   :  { %353 = vmatprep.mubr.f32.mxu0 %v40_v18  ;;  %3386 = vmatpush1.bf16.msra.mxu0 %v3785_v27  ;;  %v47_v27 = vld [vmem:[%s4807_s0 + $0xa0] sm:$0xff]  ;;  %v53_v18 = vld [vmem:[%s4807_s0 + $0xd0] sm:$0xff] }
  0x4d   :  { %3387 = vmatprep.subr.bf16.mxu0 %v3672_v3 }
  0x4f   :  { %354 = vmatmul.mubr.f32.gmra.mrb[6].mxu0 %v39_v28  ;;  %v58_v28 = vld [vmem:[%s4807_s0 + $0xf8] sm:$0xff] }
  0x50   :  { %358 = vmatprep.mubr.f32.mxu0 %v44_v29  ;;  %3389 = vmatpush1.bf16.msra.mxu0 %v3802_v33  ;;  %v56_v33 = vld [vmem:[%s4807_s0 + $0xe8] sm:$0xff]  ;;  %v57_v29 = vld [vmem:[%s4807_s0 + $0xf0] sm:$0xff] }
  0x51   :  { %3390 = vmatprep.subr.bf16.mxu0 %v3672_v3 }
  0x53   :  { %359 = vmatmul.mubr.f32.gmra.mrb[8].mxu0 %v43_v22  ;;  %v62_v22 = vld [vmem:[%s4807_s0 + $0x118] sm:$0xff] }
  0x54   :  { %363 = vmatprep.mubr.f32.mxu0 %v48_v30  ;;  %3392 = vmatpush1.bf16.msra.mxu0 %v3819_v39  ;;  %v68_v39 = vld [vmem:[%s4807_s0 + $0x148] sm:$0xff]  ;;  %v61_v30 = vld [vmem:[%s4807_s0 + $0x110] sm:$0xff] }
  0x55   :  { %3393 = vmatprep.subr.bf16.mxu0 %v3672_v3 }
  0x57   :  { %364 = vmatmul.mubr.f32.gmra.mrb[10].mxu0 %v47_v27  ;;  %v66_v27 = vld [vmem:[%s4807_s0 + $0x138] sm:$0xff] }
  0x58   :  { %368 = vmatprep.mubr.f32.mxu0 %v52_v31  ;;  %3395 = vmatpush1.bf16.msra.mxu0 %v3836_v45  ;;  %v80_v45 = vld [vmem:[%s4807_s0 + $0x1a8] sm:$0xff]  ;;  %v65_v31 = vld [vmem:[%s4807_s0 + $0x130] sm:$0xff] }
  0x59   :  { %3396 = vmatprep.subr.bf16.mxu0 %v3672_v3 }
  0x5b   :  { %369 = vmatmul.mubr.f32.gmra.mrb[12].mxu0 %v51_v32  ;;  %v70_v32 = vld [vmem:[%s4807_s0 + $0x158] sm:$0xff] }
  0x5c   :  { %373 = vmatprep.mubr.f32.mxu0 %v56_v33  ;;  %3398 = vmatpush1.bf16.msra.mxu0 %v3853_v51  ;;  %v92_v51 = vld [vmem:[%s4807_s0 + $0x208] sm:$0xff]  ;;  %v69_v33 = vld [vmem:[%s4807_s0 + $0x150] sm:$0xff] }
  0x5d   :  { %3399 = vmatprep.subr.bf16.mxu0 %v3672_v3 }
  0x5f   :  { %374 = vmatmul.mubr.f32.gmra.mrb[14].mxu0 %v55_v34  ;;  %v74_v34 = vld [vmem:[%s4807_s0 + $0x178] sm:$0xff] }
  0x60   :  { %378 = vmatprep.mubr.f32.mxu0 %v60_v35  ;;  %3401 = vmatpush1.bf16.msra.mxu0 %v3874_v58  ;;  %v103_v58 = vld [vmem:[%s4807_s0 + $0x260] sm:$0xff]  ;;  %v73_v35 = vld [vmem:[%s4807_s0 + $0x170] sm:$0xff] }
  0x61   :  { %3402 = vmatprep.subr.bf16.mxu0 %v3672_v3 }
  0x63   :  { %379 = vmatmul.mubr.f32.gmra.mrb[16].mxu0 %v59_v36  ;;  %v78_v36 = vld [vmem:[%s4807_s0 + $0x198] sm:$0xff] }
  0x64   :  { %383 = vmatprep.mubr.f32.mxu0 %v64_v37  ;;  %3404 = vmatpush1.bf16.msra.mxu0 %v3892_v0  ;;  %v115_v0 = vld [vmem:[%s4807_s0 + $0x2c0] sm:$0xff]  ;;  %v77_v37 = vld [vmem:[%s4807_s0 + $0x190] sm:$0xff] }
  0x67   :  { %384 = vmatmul.mubr.f32.gmra.mrb[18].mxu0 %v63_v38  ;;  %v82_v38 = vld [vmem:[%s4807_s0 + $0x1b8] sm:$0xff] }
  0x68   :  { %388 = vmatprep.mubr.f32.mxu0 %v68_v39  ;;  %v81_v39 = vld [vmem:[%s4807_s0 + $0x1b0] sm:$0xff] }
  0x6b   :  { %389 = vmatmul.mubr.f32.gmra.mrb[20].mxu0 %v67_v40  ;;  %v86_v40 = vld [vmem:[%s4807_s0 + $0x1d8] sm:$0xff] }
  0x6c   :  { %393 = vmatprep.mubr.f32.mxu0 %v72_v41  ;;  %v85_v41 = vld [vmem:[%s4807_s0 + $0x1d0] sm:$0xff] }
  0x6f   :  { %394 = vmatmul.mubr.f32.gmra.mrb[22].mxu0 %v71_v42  ;;  %v90_v42 = vld [vmem:[%s4807_s0 + $0x1f8] sm:$0xff] }
  0x70   :  { %398 = vmatprep.mubr.f32.mxu0 %v76_v43  ;;  %v89_v43 = vld [vmem:[%s4807_s0 + $0x1f0] sm:$0xff] }
  0x73   :  { %399 = vmatmul.mubr.f32.gmra.mrb[24].mxu0 %v75_v44  ;;  %v94_v44 = vld [vmem:[%s4807_s0 + $0x218] sm:$0xff] }
  0x74   :  { %403 = vmatprep.mubr.f32.mxu0 %v80_v45  ;;  %v93_v45 = vld [vmem:[%s4807_s0 + $0x210] sm:$0xff] }
  0x77   :  { %404 = vmatmul.mubr.f32.gmra.mrb[26].mxu0 %v79_v46  ;;  %v98_v46 = vld [vmem:[%s4807_s0 + $0x238] sm:$0xff] }
  0x78   :  { %408 = vmatprep.mubr.f32.mxu0 %v84_v47  ;;  %v97_v47 = vld [vmem:[%s4807_s0 + $0x230] sm:$0xff] }
  0x7b   :  { %409 = vmatmul.mubr.f32.gmra.mrb[28].mxu0 %v83_v48  ;;  %v102_v48 = vld [vmem:[%s4807_s0 + $0x258] sm:$0xff] }
  0x7c   :  { %413 = vmatprep.mubr.f32.mxu0 %v88_v49  ;;  %v101_v49 = vld [vmem:[%s4807_s0 + $0x250] sm:$0xff] }
  0x7f   :  { %414 = vmatmul.mubr.f32.gmra.mrb[30].mxu0 %v87_v50  ;;  %v106_v50 = vld [vmem:[%s4807_s0 + $0x278] sm:$0xff] }
  0x80   :  { %418 = vmatprep.mubr.f32.mxu0 %v92_v51  ;;  %v105_v51 = vld [vmem:[%s4807_s0 + $0x270] sm:$0xff] }
  0x83   :  { %419 = vmatmul.mubr.f32.gmra.mrb[32].mxu0 %v91_v52  ;;  %v110_v52 = vld [vmem:[%s4807_s0 + $0x298] sm:$0xff] }
  0x84   :  { %423 = vmatprep.mubr.f32.mxu0 %v96_v53  ;;  %v109_v53 = vld [vmem:[%s4807_s0 + $0x290] sm:$0xff] }
  0x87   :  { %424 = vmatmul.mubr.f32.gmra.mrb[34].mxu0 %v95_v54  ;;  %v114_v54 = vld [vmem:[%s4807_s0 + $0x2b8] sm:$0xff] }
  0x88   :  { %428 = vmatprep.mubr.f32.mxu0 %v100_v55  ;;  %v113_v55 = vld [vmem:[%s4807_s0 + $0x2b0] sm:$0xff] }
  0x8b   :  { %429 = vmatmul.mubr.f32.gmra.mrb[36].mxu0 %v99_v56  ;;  %v118_v56 = vld [vmem:[%s4807_s0 + $0x2d8] sm:$0xff] }
  0x8c   :  { %433 = vmatprep.mubr.f32.mxu0 %v104_v57 }
  0x8f   :  { %434 = vmatmul.mubr.f32.gmra.mrb[38].mxu0 %v103_v58 }
  0x90   :  { %438 = vmatprep.mubr.f32.mxu0 %v108_v59  ;;  %v117_v59 = vld [vmem:[%s4807_s0 + $0x2d0] sm:$0xff] }
  0x93   :  { %439 = vmatmul.mubr.f32.gmra.mrb[40].mxu0 %v107_v60  ;;  %v122_v60 = vld [vmem:[%s4807_s0 + $0x2f8] sm:$0xff] }
  0x94   :  { %443 = vmatprep.mubr.f32.mxu0 %v112_v61 }
  0x97   :  { %444 = vmatmul.mubr.f32.gmra.mrb[42].mxu0 %v111_v62 }
  0x98   :  { %448 = vmatprep.mubr.f32.mxu0 %v116_v63  ;;  %v121_v63 = vld [vmem:[%s4807_s0 + $0x2f0] sm:$0xff] }
  0x9b   :  { %449 = vmatmul.mubr.f32.gmra.mrb[44].mxu0 %v115_v0  ;;  %v126_v0 = vld [vmem:[%s4807_s0 + $0x318] sm:$0xff] }
  0x9c   :  { %453 = vmatprep.mubr.f32.mxu0 %v120_v1 }
  0x9f   :  { %454 = vmatmul.mubr.f32.gmra.mrb[46].mxu0 %v119_v2 }
  0xa0   :  { %458 = vmatprep.mubr.f32.mxu0 %v124_v4  ;;  %v125_v4 = vld [vmem:[%s4807_s0 + $0x310] sm:$0xff] }
  0xa3   :  { %459 = vmatmul.mubr.f32.gmra.mrb[48].mxu0 %v123_v5  ;;  %v740_v5 = vld [vmem:[%s4810_s3 + $0x20] sm:$0xff] }
  0xa4   :  { %463 = vmatprep.mubr.f32.mxu0 %v128_v6  ;;  %v741_v6 = vld [vmem:[%s4810_s3 + $0x28] sm:$0xff] }
  0xa7   :  { %464 = vmatmul.mubr.f32.gmra.mrb[50].mxu0 %v127_v7  ;;  %v3406_v7 = vpack.c.bf16 %v741_v6, %v740_v5 }
  0xa8   :  { %468 = vmatprep.mubr.f32.mxu0 %v132_v8  ;;  %v742_v8 = vld [vmem:[%s4810_s3 + $0x30] sm:$0xff] }
  0xa9   :  { %3407 = vmatpush3.bf16.msra.mxu1 %v3406_v7 }
  0xaa   :  { %3408 = vmatprep.subr.bf16.mxu1 %v3672_v3 }
  0xab   :  { %469 = vmatmul.mubr.f32.gmra.mrb[52].mxu0 %v131_v9  ;;  %v743_v9 = vld [vmem:[%s4810_s3 + $0x38] sm:$0xff] }
  0xac   :  { %473 = vmatprep.mubr.f32.mxu0 %v136_v10  ;;  %v3409_v10 = vpack.c.bf16 %v743_v9, %v742_v8  ;;  %v2857_v8 = vld [vmem:[%s4809_s2] ss:$0 sm:$0xff] }
  0xae   :  { %3410 = vmatpush3.bf16.msra.mxu1 %v3409_v10 }
  0xaf   :  { %474 = vmatmul.mubr.f32.gmra.mrb[54].mxu0 %v135_v11  ;;  %3411 = vmatprep.subr.bf16.mxu1 %v3672_v3  ;;  %v3674_v11 = vmov 0.0  }
  0xb0   :  { %2829 = vmatprep.mubr.msk.f32.mxu0 %vm189_vm0, %v30_v12  ;;  %3034 = vmatprep.mubr.msk.f32.mxu1 %vm3673_vm1, %v3674_v11 }
  0xb3   :  { %544 = vmatmul.mubr.f32.vlgmr.msra.gmra.mrb[0].mxu0 %v29_v13 }
  0xb4   :  { %2830 = vmatprep.mubr.msk.f32.mxu0 %vm189_vm0, %v34_v14 }
  0xb7   :  { %549 = vmatmul.mubr.f32.gmra.mrb[2].mxu0 %v33_v15 }
  0xb8   :  { %2831 = vmatprep.mubr.msk.f32.mxu0 %vm189_vm0, %v38_v16 }
  0xbb   :  { %554 = vmatmul.mubr.f32.gmra.mrb[4].mxu0 %v37_v17 }
  0xbc   :  { %2832 = vmatprep.mubr.msk.f32.mxu0 %vm189_vm0, %v42_v19 }
  0xbf   :  { %559 = vmatmul.mubr.f32.gmra.mrb[6].mxu0 %v41_v20 }
  0xc0   :  { %2833 = vmatprep.mubr.msk.f32.mxu0 %vm189_vm0, %v46_v21 }
  0xc3   :  { %564 = vmatmul.mubr.f32.gmra.mrb[8].mxu0 %v45_v23 }
  0xc4   :  { %2834 = vmatprep.mubr.msk.f32.mxu0 %vm189_vm0, %v50_v24 }
  0xc7   :  { %569 = vmatmul.mubr.f32.gmra.mrb[10].mxu0 %v49_v25 }
  0xc8   :  { %2835 = vmatprep.mubr.msk.f32.mxu0 %vm189_vm0, %v54_v26 }
  0xcb   :  { %574 = vmatmul.mubr.f32.gmra.mrb[12].mxu0 %v53_v18 }
  0xcc   :  { %2836 = vmatprep.mubr.msk.f32.mxu0 %vm189_vm0, %v58_v28 }
  0xcf   :  { %579 = vmatmul.mubr.f32.gmra.mrb[14].mxu0 %v57_v29 }
  0xd0   :  { %2837 = vmatprep.mubr.msk.f32.mxu0 %vm189_vm0, %v62_v22 }
  0xd3   :  { %584 = vmatmul.mubr.f32.gmra.mrb[16].mxu0 %v61_v30 }
  0xd4   :  { %2838 = vmatprep.mubr.msk.f32.mxu0 %vm189_vm0, %v66_v27 }
  0xd7   :  { %589 = vmatmul.mubr.f32.gmra.mrb[18].mxu0 %v65_v31 }
  0xd8   :  { %2839 = vmatprep.mubr.msk.f32.mxu0 %vm189_vm0, %v70_v32 }
  0xdb   :  { %594 = vmatmul.mubr.f32.gmra.mrb[20].mxu0 %v69_v33 }
  0xdc   :  { %2840 = vmatprep.mubr.msk.f32.mxu0 %vm189_vm0, %v74_v34 }
  0xdf   :  { %599 = vmatmul.mubr.f32.gmra.mrb[22].mxu0 %v73_v35 }
  0xe0   :  { %2841 = vmatprep.mubr.msk.f32.mxu0 %vm189_vm0, %v78_v36 }
  0xe3   :  { %604 = vmatmul.mubr.f32.gmra.mrb[24].mxu0 %v77_v37 }
  0xe4   :  { %2842 = vmatprep.mubr.msk.f32.mxu0 %vm189_vm0, %v82_v38 }
  0xe7   :  { %609 = vmatmul.mubr.f32.gmra.mrb[26].mxu0 %v81_v39 }
  0xe8   :  { %2843 = vmatprep.mubr.msk.f32.mxu0 %vm189_vm0, %v86_v40 }
  0xeb   :  { %614 = vmatmul.mubr.f32.gmra.mrb[28].mxu0 %v85_v41 }
  0xec   :  { %2844 = vmatprep.mubr.msk.f32.mxu0 %vm189_vm0, %v90_v42 }
  0xef   :  { %619 = vmatmul.mubr.f32.gmra.mrb[30].mxu0 %v89_v43 }
  0xf0   :  { %2845 = vmatprep.mubr.msk.f32.mxu0 %vm189_vm0, %v94_v44 }
  0xf3   :  { %624 = vmatmul.mubr.f32.gmra.mrb[32].mxu0 %v93_v45 }
  0xf4   :  { %2846 = vmatprep.mubr.msk.f32.mxu0 %vm189_vm0, %v98_v46 }
  0xf7   :  { %629 = vmatmul.mubr.f32.gmra.mrb[34].mxu0 %v97_v47 }
  0xf8   :  { %2847 = vmatprep.mubr.msk.f32.mxu0 %vm189_vm0, %v102_v48 }
  0xfb   :  { %634 = vmatmul.mubr.f32.gmra.mrb[36].mxu0 %v101_v49 }
  0xfc   :  { %2848 = vmatprep.mubr.msk.f32.mxu0 %vm189_vm0, %v106_v50 }
  0xff   :  { %639 = vmatmul.mubr.f32.gmra.mrb[38].mxu0 %v105_v51 }
 0x100   :  { %2849 = vmatprep.mubr.msk.f32.mxu0 %vm189_vm0, %v110_v52 }
 0x103   :  { %644 = vmatmul.mubr.f32.gmra.mrb[40].mxu0 %v109_v53 }
 0x104   :  { %2850 = vmatprep.mubr.msk.f32.mxu0 %vm189_vm0, %v114_v54  ;;  %v670_v57 = vpop.f32.mrb[0].mxu1 }
 0x105   :  { %v672_v58 = vpop.f32.mrb[1].mxu1 }
 0x107   :  { %649 = vmatmul.mubr.f32.gmra.mrb[42].mxu0 %v113_v55 }
 0x108   :  { %2851 = vmatprep.mubr.msk.f32.mxu0 %vm189_vm0, %v118_v56  ;;  %v675_v61 = vpop.f32.mrb[2].mxu1 }
 0x109   :  { %v677_v62 = vpop.f32.mrb[3].mxu1 }
 0x10b   :  { %654 = vmatmul.mubr.f32.gmra.mrb[44].mxu0 %v117_v59 }
 0x10c   :  { %2852 = vmatprep.mubr.msk.f32.mxu0 %vm189_vm0, %v122_v60  ;;  %v680_v1 = vpop.f32.mrb[4].mxu1 }
 0x10d   :  { %v682_v2 = vpop.f32.mrb[5].mxu1 }
 0x10f   :  { %659 = vmatmul.mubr.f32.gmra.mrb[46].mxu0 %v121_v63 }
 0x110   :  { %2853 = vmatprep.mubr.msk.f32.mxu0 %vm189_vm0, %v126_v0 }
 0x113   :  { %664 = vmatmul.mubr.f32.gmra.mrb[48].mxu0 %v125_v4 }
 0x17a   :  { %v465_v12 = vpop.f32.mrb[50].mxu0 }
 0x17b   :  { %v467_v13 = vpop.f32.mrb[51].mxu0  ;;  %v671_v14 = vadd.f32 %v670_v57, %v465_v12 }
 0x17e   :  { %v470_v15 = vpop.f32.mrb[52].mxu0 }
 0x17f   :  { %v472_v16 = vpop.f32.mrb[53].mxu0  ;;  %v4317_v17 = vadd.f32 %v675_v61, %v470_v15 }
 0x182   :  { %v475_v19 = vpop.f32.mrb[54].mxu0 }
 0x183   :  { %v477_v20 = vpop.f32.mrb[55].mxu0  ;;  %v4319_v21 = vadd.f32 %v680_v1, %v475_v19 }
 0x186   :  { %v545_v23 = vpop.f32.mrb[0].mxu0 }
 0x187   :  { %v547_v24 = vpop.f32.mrb[1].mxu0 }
 0x18a   :  { %v550_v25 = vpop.f32.mrb[2].mxu0 }
 0x18b   :  { %v552_v26 = vpop.f32.mrb[3].mxu0 }
 0x18e   :  { %v555_v18 = vpop.f32.mrb[4].mxu0 }
 0x18f   :  { %v557_v28 = vpop.f32.mrb[5].mxu0 }
 0x192   :  { %v560_v29 = vpop.f32.mrb[6].mxu0 }
 0x193   :  { %v562_v22 = vpop.f32.mrb[7].mxu0 }
 0x196   :  { %v565_v30 = vpop.f32.mrb[8].mxu0 }
 0x197   :  { %v567_v27 = vpop.f32.mrb[9].mxu0 }
 0x19a   :  { %v570_v31 = vpop.f32.mrb[10].mxu0 }
 0x19b   :  { %v572_v32 = vpop.f32.mrb[11].mxu0 }
 0x19e   :  { %v575_v33 = vpop.f32.mrb[12].mxu0 }
 0x19f   :  { %v577_v34 = vpop.f32.mrb[13].mxu0 }
 0x1a2   :  { %v580_v35 = vpop.f32.mrb[14].mxu0 }
 0x1a3   :  { %v684_v36 = vmax.f32 %v545_v23, %v580_v35  ;;  %v582_v37 = vpop.f32.mrb[15].mxu0 }
 0x1a6   :  { %v585_v38 = vpop.f32.mrb[16].mxu0 }
 0x1a7   :  { %v685_v39 = vmax.f32 %v550_v25, %v585_v38  ;;  %v587_v40 = vpop.f32.mrb[17].mxu0  ;;  %v735_v38 = vld [vmem:[%s4810_s3] sm:$0xff] }
 0x1aa   :  { %v590_v41 = vpop.f32.mrb[18].mxu0 }
 0x1ab   :  { %v686_v42 = vmax.f32 %v555_v18, %v590_v41  ;;  %v592_v43 = vpop.f32.mrb[19].mxu0 }
 0x1ae   :  { %v595_v44 = vpop.f32.mrb[20].mxu0 }
 0x1af   :  { %v687_v45 = vmax.f32 %v560_v29, %v595_v44  ;;  %v597_v46 = vpop.f32.mrb[21].mxu0 }
 0x1b0   :  { %v737_v46 = vld [vmem:[%s4810_s3 + $0x10] sm:$0xff] }
 0x1b2   :  { %v600_v47 = vpop.f32.mrb[22].mxu0 }
 0x1b3   :  { %v688_v48 = vmax.f32 %v565_v30, %v600_v47  ;;  %v602_v49 = vpop.f32.mrb[23].mxu0  ;;  %v738_v47 = vld [vmem:[%s4810_s3 + $0x18] sm:$0xff] }
 0x1b6   :  { %v605_v50 = vpop.f32.mrb[24].mxu0 }
 0x1b7   :  { %v689_v51 = vmax.f32 %v570_v31, %v605_v50  ;;  %v607_v52 = vpop.f32.mrb[25].mxu0  ;;  %v3415_v50 = vpack.c.bf16 %v738_v47, %v737_v46  ;;  %v1523_v46 = vld [vmem:[%s4810_s3 + $0x140] sm:$0xff]  ;;  %v1524_v47 = vld [vmem:[%s4810_s3 + $0x148] sm:$0xff] }
 0x1b8   :  { %v891_v52 = vld [vmem:[%s4810_s3 + $0x40] sm:$0xff] }
 0x1ba   :  { %v610_v53 = vpop.f32.mrb[26].mxu0 }
 0x1bb   :  { %v690_v54 = vmax.f32 %v575_v33, %v610_v53  ;;  %v612_v55 = vpop.f32.mrb[27].mxu0  ;;  %v892_v53 = vld [vmem:[%s4810_s3 + $0x48] sm:$0xff] }
 0x1bc   :  { %v893_v55 = vld [vmem:[%s4810_s3 + $0x50] sm:$0xff] }
 0x1be   :  { %v615_v56 = vpop.f32.mrb[28].mxu0 }
 0x1bf   :  { %v691_v57 = vmax.f32 %v684_v36, %v615_v56  ;;  %v617_v58 = vpop.f32.mrb[29].mxu0  ;;  %v894_v56 = vld [vmem:[%s4810_s3 + $0x58] sm:$0xff] }
 0x1c0   :  { %v3421_v58 = vpack.c.bf16 %v894_v56, %v893_v55  ;;  %v1604_v56 = vld [vmem:[%s4810_s3 + $0x170] sm:$0xff] }
 0x1c2   :  { %v620_v59 = vpop.f32.mrb[30].mxu0 }
 0x1c3   :  { %v692_v60 = vmax.f32 %v685_v39, %v620_v59  ;;  %v622_v61 = vpop.f32.mrb[31].mxu0  ;;  %v736_v39 = vld [vmem:[%s4810_s3 + $0x8] sm:$0xff]  ;;  %v970_v59 = vld [vmem:[%s4810_s3 + $0x60] sm:$0xff] }
 0x1c6   :  { %v625_v62 = vpop.f32.mrb[32].mxu0 }
 0x1c7   :  { %v693_v63 = vmax.f32 %v686_v42, %v625_v62  ;;  %v627_v0 = vpop.f32.mrb[33].mxu0  ;;  %v3412_v42 = vpack.c.bf16 %v736_v39, %v735_v38  ;;  %v972_v62 = vld [vmem:[%s4810_s3 + $0x70] sm:$0xff]  ;;  %v1444_v39 = vld [vmem:[%s4810_s3 + $0x120] sm:$0xff] }
 0x1ca   :  { %v630_v1 = vpop.f32.mrb[34].mxu0 }
 0x1cb   :  { %v694_v2 = vmax.f32 %v687_v45, %v630_v1  ;;  %v632_v4 = vpop.f32.mrb[35].mxu0 }
 0x1cc   :  { %v1050_v4 = vld [vmem:[%s4810_s3 + $0x88] sm:$0xff] }
 0x1ce   :  { %v635_v5 = vpop.f32.mrb[36].mxu0 }
 0x1cf   :  { %v695_v6 = vmax.f32 %v688_v48, %v635_v5  ;;  %v637_v7 = vpop.f32.mrb[37].mxu0 }
 0x1d0   :  { %v1052_v7 = vld [vmem:[%s4810_s3 + $0x98] sm:$0xff] }
 0x1d1   :  { %v702_v9 = vmax.f32 %v695_v6, %v671_v14  ;;  %v1051_v6 = vld [vmem:[%s4810_s3 + $0x90] sm:$0xff] }
 0x1d2   :  { %v640_v10 = vpop.f32.mrb[38].mxu0 }
 0x1d3   :  { %v716_v12 = vadd.f32 %v2857_v8, %v702_v9  ;;  %v696_v13 = vmax.f32 %v689_v51, %v640_v10  ;;  %v642_v15 = vpop.f32.mrb[39].mxu0  ;;  %v3433_v9 = vpack.c.bf16 %v1052_v7, %v1051_v6  ;;  %v1128_v10 = vld [vmem:[%s4810_s3 + $0xa0] sm:$0xff]  ;;  %v1762_v7 = vld [vmem:[%s4810_s3 + $0x1b0] sm:$0xff] }
 0x1d4   :  { %v1130_v15 = vld [vmem:[%s4810_s3 + $0xb0] sm:$0xff] }
 0x1d5   :  { %v723_v16 = vmax.f32 %v716_v12, 0.0  ;;  %v703_v19 = vmax.f32 %v696_v13, %v4317_v17  ;;  %v1129_v12 = vld [vmem:[%s4810_s3 + $0xa8] sm:$0xff] }
 0x1d6   :  { %v645_v20 = vpop.f32.mrb[40].mxu0  ;;  %v3436_v13 = vpack.c.bf16 %v1129_v12, %v1128_v10  ;;  %v1839_v12 = vld [vmem:[%s4810_s3 + $0x1c0] sm:$0xff] }
 0x1d7   :  { %731 = vst.msk [vmem:[#allocation2 + $0x20] sm:$0xff] %vm726_vm2, %v723_v16  ;;  %v717_v23 = vadd.f32 %v2857_v8, %v703_v19  ;;  %v697_v24 = vmax.f32 %v690_v54, %v645_v20  ;;  %v647_v25 = vpop.f32.mrb[41].mxu0  ;;  %v3418_v54 = vpack.c.bf16 %v892_v53, %v891_v52  ;;  %v1131_v16 = vld [vmem:[%s4810_s3 + $0xb8] sm:$0xff]  ;;  %v1602_v53 = vld [vmem:[%s4810_s3 + $0x160] sm:$0xff] }
 0x1d8   :  { %v3439_v20 = vpack.c.bf16 %v1131_v16, %v1130_v15  ;;  %v1841_v16 = vld [vmem:[%s4810_s3 + $0x1d0] sm:$0xff] }
 0x1d9   :  { %v724_v26 = vmax.f32 %v717_v23, 0.0  ;;  %v704_v18 = vmax.f32 %v697_v24, %v4319_v21  ;;  %v1207_v23 = vld [vmem:[%s4810_s3 + $0xc0] sm:$0xff]  ;;  %v1208_v24 = vld [vmem:[%s4810_s3 + $0xc8] sm:$0xff] }
 0x1da   :  { %v650_v28 = vpop.f32.mrb[42].mxu0  ;;  %v3442_v25 = vpack.c.bf16 %v1208_v24, %v1207_v23  ;;  %v1918_v24 = vld [vmem:[%s4810_s3 + $0x1e0] sm:$0xff] }
 0x1db   :  { %732 = vst.msk [vmem:[#allocation2 + $0x28] sm:$0xff] %vm726_vm2, %v724_v26  ;;  %v718_v14 = vadd.f32 %v2857_v8, %v704_v18  ;;  %v698_v29 = vmax.f32 %v691_v57, %v650_v28  ;;  %v652_v22 = vpop.f32.mrb[43].mxu0  ;;  %v1209_v26 = vld [vmem:[%s4810_s3 + $0xd0] sm:$0xff]  ;;  %v1210_v18 = vld [vmem:[%s4810_s3 + $0xd8] sm:$0xff] }
 0x1dc   :  { %v1287_v22 = vld [vmem:[%s4810_s3 + $0xe8] sm:$0xff] }
 0x1dd   :  { %v725_v30 = vmax.f32 %v718_v14, 0.0  ;;  %v712_v27 = vadd.f32 %v2857_v8, %v698_v29  ;;  %v3445_v14 = vpack.c.bf16 %v1210_v18, %v1209_v26  ;;  %v1286_v29 = vld [vmem:[%s4810_s3 + $0xe0] sm:$0xff]  ;;  %v1920_v18 = vld [vmem:[%s4810_s3 + $0x1f0] sm:$0xff] }
 0x1de   :  { %v655_v31 = vpop.f32.mrb[44].mxu0 }
 0x1df   :  { %733 = vst.msk [vmem:[#allocation2 + $0x30] sm:$0xff] %vm726_vm2, %v725_v30  ;;  %v719_v17 = vmax.f32 %v712_v27, 0.0  ;;  %v699_v32 = vmax.f32 %v692_v60, %v655_v31  ;;  %v657_v33 = vpop.f32.mrb[45].mxu0  ;;  %v971_v60 = vld [vmem:[%s4810_s3 + $0x68] sm:$0xff]  ;;  %v3448_v30 = vpack.c.bf16 %v1287_v22, %v1286_v29  ;;  %v1288_v27 = vld [vmem:[%s4810_s3 + $0xf0] sm:$0xff]  ;;  %v1289_v31 = vld [vmem:[%s4810_s3 + $0xf8] sm:$0xff] }
 0x1e0   :  { %v3424_v61 = vpack.c.bf16 %v971_v60, %v970_v59  ;;  %v1365_v33 = vld [vmem:[%s4810_s3 + $0x100] sm:$0xff] }
 0x1e1   :  { %727 = vst.msk [vmem:[#allocation2] sm:$0xff] %vm726_vm2, %v719_v17  ;;  %v713_v34 = vadd.f32 %v2857_v8, %v699_v32  ;;  %v3451_v32 = vpack.c.bf16 %v1289_v31, %v1288_v27  ;;  %v1681_v60 = vld [vmem:[%s4810_s3 + $0x180] sm:$0xff]  ;;  %v1999_v31 = vld [vmem:[%s4810_s3 + $0x210] sm:$0xff] }
 0x1e2   :  { %v660_v35 = vpop.f32.mrb[46].mxu0  ;;  %v1997_v22 = vld [vmem:[%s4810_s3 + $0x200] sm:$0xff] }
 0x1e3   :  { %v720_v36 = vmax.f32 %v713_v34, 0.0  ;;  %v700_v21 = vmax.f32 %v693_v63, %v660_v35  ;;  %v662_v37 = vpop.f32.mrb[47].mxu0  ;;  %v973_v63 = vld [vmem:[%s4810_s3 + $0x78] sm:$0xff]  ;;  %v1366_v34 = vld [vmem:[%s4810_s3 + $0x108] sm:$0xff] }
 0x1e4   :  { %v3427_v1 = vpack.c.bf16 %v973_v63, %v972_v62  ;;  %v3454_v35 = vpack.c.bf16 %v1366_v34, %v1365_v33  ;;  %v1683_v63 = vld [vmem:[%s4810_s3 + $0x190] sm:$0xff]  ;;  %v2076_v34 = vld [vmem:[%s4810_s3 + $0x220] sm:$0xff] }
 0x1e5   :  { %728 = vst.msk [vmem:[#allocation2 + $0x8] sm:$0xff] %vm726_vm2, %v720_v36  ;;  %v714_v40 = vadd.f32 %v2857_v8, %v700_v21  ;;  %v1367_v36 = vld [vmem:[%s4810_s3 + $0x110] sm:$0xff]  ;;  %v1368_v21 = vld [vmem:[%s4810_s3 + $0x118] sm:$0xff] }
 0x1e6   :  { %v665_v41 = vpop.f32.mrb[48].mxu0  ;;  %v3457_v38 = vpack.c.bf16 %v1368_v21, %v1367_v36  ;;  %v2078_v21 = vld [vmem:[%s4810_s3 + $0x230] sm:$0xff] }
 0x1e7   :  { %v721_v43 = vmax.f32 %v714_v40, 0.0  ;;  %v701_v44 = vmax.f32 %v694_v2, %v665_v41  ;;  %v667_v45 = vpop.f32.mrb[49].mxu0  ;;  %v1049_v2 = vld [vmem:[%s4810_s3 + $0x80] sm:$0xff]  ;;  %v1445_v40 = vld [vmem:[%s4810_s3 + $0x128] sm:$0xff] }
 0x1e8   :  { %v739_v48 = vld [vmem:[#allocation2 + $0x2] sm:$0x3]  ;;  %v734_v57 = vld [vmem:[#allocation2] sm:$0x3]  ;;  %v890_v0 = vld [vmem:[#allocation2 + $0x4] sm:$0x3]  ;;  %v3430_v5 = vpack.c.bf16 %v1050_v4, %v1049_v2  ;;  %v3460_v41 = vpack.c.bf16 %v1445_v40, %v1444_v39 }
 0x1e9   :  { %729 = vst.msk [vmem:[#allocation2 + $0x10] sm:$0xff] %vm726_vm2, %v721_v43  ;;  %v715_v49 = vadd.f32 %v2857_v8, %v701_v44  ;;  %3035 = vmatmul.mubr.msk.f32.vlgmr.msra.gmra.mrb[6].mxu1 %vm726_vm2, %v739_v48  ;;  %v969_v8 = vld [vmem:[#allocation2 + $0x6] sm:$0x3]  ;;  %v1447_v43 = vld [vmem:[%s4810_s3 + $0x138] sm:$0xff]  ;;  %v3466_v48 = vpack.c.bf16 %v1524_v47, %v1523_v46 }
 0x1ea   :  { %3413 = vmatpush3.bf16.msra.mxu1 %v3412_v42  ;;  %3045 = vmatprep.mubr.msk.f32.mxu1 %vm3673_vm1, %v3674_v11  ;;  %v1446_v42 = vld [vmem:[%s4810_s3 + $0x130] sm:$0xff]  ;;  %v1760_v4 = vld [vmem:[%s4810_s3 + $0x1a0] sm:$0xff] }
 0x1eb   :  { %v722_v51 = vmax.f32 %v715_v49, 0.0  ;;  %3414 = vmatprep.subr.bf16.mxu1 %v3672_v3  ;;  %v3463_v45 = vpack.c.bf16 %v1447_v43, %v1446_v42  ;;  %v1525_v49 = vld [vmem:[%s4810_s3 + $0x150] sm:$0xff]  ;;  %v2155_v40 = vld [vmem:[%s4810_s3 + $0x240] sm:$0xff] }
 0x1ec   :  { %v1048_v19 = vld [vmem:[#allocation2 + $0x8] sm:$0x3]  ;;  %v1127_v28 = vld [vmem:[#allocation2 + $0xa] sm:$0x3]  ;;  %v1206_v17 = vld [vmem:[#allocation2 + $0xc] sm:$0x3] }
 0x1ed   :  { %730 = vst.msk [vmem:[#allocation2 + $0x18] sm:$0xff] %vm726_vm2, %v722_v51  ;;  %v1285_v37 = vld [vmem:[#allocation2 + $0xe] sm:$0x3]  ;;  %v2157_v43 = vld [vmem:[%s4810_s3 + $0x250] sm:$0xff]  ;;  %v2234_v47 = vld [vmem:[%s4810_s3 + $0x260] sm:$0xff] }
 0x1ee   :  { %3416 = vmatpush3.bf16.msra.mxu1 %v3415_v50  ;;  %v1526_v50 = vld [vmem:[%s4810_s3 + $0x158] sm:$0xff] }
 0x1ef   :  { %3417 = vmatprep.subr.bf16.mxu1 %v3672_v3  ;;  %v3469_v52 = vpack.c.bf16 %v1526_v50, %v1525_v49  ;;  %v2236_v50 = vld [vmem:[%s4810_s3 + $0x270] sm:$0xff] }
 0x1f0   :  { %v1364_v44 = vld [vmem:[#allocation2 + $0x10] sm:$0x3]  ;;  %v1443_v51 = vld [vmem:[#allocation2 + $0x12] sm:$0x3] }
 0x1f1   :  { %3046 = vmatmul.mubr.msk.f32.vlgmr.msra.gmra.mrb[8].mxu1 %vm726_vm2, %v734_v57  ;;  %v1605_v57 = vld [vmem:[%s4810_s3 + $0x178] sm:$0xff] }
 0x1f2   :  { %3419 = vmatpush3.bf16.msra.mxu1 %v3418_v54  ;;  %3056 = vmatprep.mubr.msk.f32.mxu1 %vm3673_vm1, %v3674_v11  ;;  %v1603_v54 = vld [vmem:[%s4810_s3 + $0x168] sm:$0xff]  ;;  %v3475_v59 = vpack.c.bf16 %v1605_v57, %v1604_v56  ;;  %v2315_v57 = vld [vmem:[%s4810_s3 + $0x290] sm:$0xff] }
 0x1f3   :  { %3420 = vmatprep.subr.bf16.mxu1 %v3672_v3  ;;  %v3472_v55 = vpack.c.bf16 %v1603_v54, %v1602_v53  ;;  %v2313_v54 = vld [vmem:[%s4810_s3 + $0x280] sm:$0xff] }
 0x1f6   :  { %3422 = vmatpush3.bf16.msra.mxu1 %v3421_v58  ;;  %v1522_v58 = vld [vmem:[#allocation2 + $0x14] sm:$0x3] }
 0x1f7   :  { %3423 = vmatprep.subr.bf16.mxu1 %v3672_v3 }
 0x1f9   :  { %3057 = vmatmul.mubr.msk.f32.vlgmr.msra.gmra.mrb[10].mxu1 %vm726_vm2, %v890_v0  ;;  %v1684_v0 = vld [vmem:[%s4810_s3 + $0x198] sm:$0xff] }
 0x1fa   :  { %3425 = vmatpush3.bf16.msra.mxu1 %v3424_v61  ;;  %3067 = vmatprep.mubr.msk.f32.mxu1 %vm3673_vm1, %v3674_v11  ;;  %v1682_v61 = vld [vmem:[%s4810_s3 + $0x188] sm:$0xff]  ;;  %v3481_v2 = vpack.c.bf16 %v1684_v0, %v1683_v63  ;;  %v2394_v0 = vld [vmem:[%s4810_s3 + $0x2b0] sm:$0xff] }
 0x1fb   :  { %3426 = vmatprep.subr.bf16.mxu1 %v3672_v3  ;;  %v3478_v62 = vpack.c.bf16 %v1682_v61, %v1681_v60  ;;  %v2392_v61 = vld [vmem:[%s4810_s3 + $0x2a0] sm:$0xff] }
 0x1fe   :  { %3428 = vmatpush3.bf16.msra.mxu1 %v3427_v1  ;;  %v1601_v1 = vld [vmem:[#allocation2 + $0x16] sm:$0x3] }
 0x1ff   :  { %3429 = vmatprep.subr.bf16.mxu1 %v3672_v3 }
 0x201   :  { %3068 = vmatmul.mubr.msk.f32.vlgmr.msra.gmra.mrb[12].mxu1 %vm726_vm2, %v969_v8  ;;  %v1763_v8 = vld [vmem:[%s4810_s3 + $0x1b8] sm:$0xff] }
 0x202   :  { %3431 = vmatpush3.bf16.msra.mxu1 %v3430_v5  ;;  %3078 = vmatprep.mubr.msk.f32.mxu1 %vm3673_vm1, %v3674_v11  ;;  %v1761_v5 = vld [vmem:[%s4810_s3 + $0x1a8] sm:$0xff]  ;;  %v3487_v10 = vpack.c.bf16 %v1763_v8, %v1762_v7  ;;  %v2473_v8 = vld [vmem:[%s4810_s3 + $0x2d0] sm:$0xff] }
 0x203   :  { %3432 = vmatprep.subr.bf16.mxu1 %v3672_v3  ;;  %v3484_v6 = vpack.c.bf16 %v1761_v5, %v1760_v4  ;;  %v2471_v5 = vld [vmem:[%s4810_s3 + $0x2c0] sm:$0xff] }
 0x206   :  { %3434 = vmatpush3.bf16.msra.mxu1 %v3433_v9  ;;  %v1680_v9 = vld [vmem:[#allocation2 + $0x18] sm:$0x3] }
 0x207   :  { %3435 = vmatprep.subr.bf16.mxu1 %v3672_v3 }
 0x209   :  { %3079 = vmatmul.mubr.msk.f32.vlgmr.msra.gmra.mrb[14].mxu1 %vm726_vm2, %v1048_v19  ;;  %v1842_v19 = vld [vmem:[%s4810_s3 + $0x1d8] sm:$0xff] }
 0x20a   :  { %3437 = vmatpush3.bf16.msra.mxu1 %v3436_v13  ;;  %3089 = vmatprep.mubr.msk.f32.mxu1 %vm3673_vm1, %v3674_v11  ;;  %v1840_v13 = vld [vmem:[%s4810_s3 + $0x1c8] sm:$0xff]  ;;  %v3493_v23 = vpack.c.bf16 %v1842_v19, %v1841_v16  ;;  %v2552_v19 = vld [vmem:[%s4810_s3 + $0x2f0] sm:$0xff] }
 0x20b   :  { %3438 = vmatprep.subr.bf16.mxu1 %v3672_v3  ;;  %v3490_v15 = vpack.c.bf16 %v1840_v13, %v1839_v12  ;;  %v2550_v13 = vld [vmem:[%s4810_s3 + $0x2e0] sm:$0xff] }
 0x20e   :  { %3440 = vmatpush3.bf16.msra.mxu1 %v3439_v20  ;;  %v1759_v20 = vld [vmem:[#allocation2 + $0x1a] sm:$0x3] }
 0x20f   :  { %3441 = vmatprep.subr.bf16.mxu1 %v3672_v3 }
 0x211   :  { %3090 = vmatmul.mubr.msk.f32.vlgmr.msra.gmra.mrb[16].mxu1 %vm726_vm2, %v1127_v28  ;;  %v1921_v28 = vld [vmem:[%s4810_s3 + $0x1f8] sm:$0xff] }
 0x212   :  { %3443 = vmatpush3.bf16.msra.mxu1 %v3442_v25  ;;  %3100 = vmatprep.mubr.msk.f32.mxu1 %vm3673_vm1, %v3674_v11  ;;  %v1919_v25 = vld [vmem:[%s4810_s3 + $0x1e8] sm:$0xff]  ;;  %v3499_v29 = vpack.c.bf16 %v1921_v28, %v1920_v18  ;;  %v2631_v28 = vld [vmem:[%s4810_s3 + $0x310] sm:$0xff] }
 0x213   :  { %3444 = vmatprep.subr.bf16.mxu1 %v3672_v3  ;;  %v3496_v26 = vpack.c.bf16 %v1919_v25, %v1918_v24  ;;  %v2629_v25 = vld [vmem:[%s4810_s3 + $0x300] sm:$0xff] }
 0x216   :  { %3446 = vmatpush3.bf16.msra.mxu1 %v3445_v14  ;;  %v1838_v14 = vld [vmem:[#allocation2 + $0x1c] sm:$0x3] }
 0x217   :  { %3447 = vmatprep.subr.bf16.mxu1 %v3672_v3 }
 0x219   :  { %3101 = vmatmul.mubr.msk.f32.vlgmr.msra.gmra.mrb[18].mxu1 %vm726_vm2, %v1206_v17  ;;  %v2000_v17 = vld [vmem:[%s4810_s3 + $0x218] sm:$0xff] }
 0x21a   :  { %3449 = vmatpush3.bf16.msra.mxu1 %v3448_v30  ;;  %3111 = vmatprep.mubr.msk.f32.mxu1 %vm3673_vm1, %v3674_v11  ;;  %v1998_v30 = vld [vmem:[%s4810_s3 + $0x208] sm:$0xff]  ;;  %v3505_v33 = vpack.c.bf16 %v2000_v17, %v1999_v31 }
 0x21b   :  { %3450 = vmatprep.subr.bf16.mxu1 %v3672_v3  ;;  %v3502_v27 = vpack.c.bf16 %v1998_v30, %v1997_v22  ;;  %v2628_v30 = vld [vmem:[#allocation2 + $0x30] sm:$0x3] }
 0x21e   :  { %3452 = vmatpush3.bf16.msra.mxu1 %v3451_v32  ;;  %v1917_v32 = vld [vmem:[#allocation2 + $0x1e] sm:$0x3] }
 0x21f   :  { %3453 = vmatprep.subr.bf16.mxu1 %v3672_v3 }
 0x221   :  { %3112 = vmatmul.mubr.msk.f32.vlgmr.msra.gmra.mrb[20].mxu1 %vm726_vm2, %v1285_v37  ;;  %v2079_v37 = vld [vmem:[%s4810_s3 + $0x238] sm:$0xff] }
 0x222   :  { %3455 = vmatpush3.bf16.msra.mxu1 %v3454_v35  ;;  %3122 = vmatprep.mubr.msk.f32.mxu1 %vm3673_vm1, %v3674_v11  ;;  %v2077_v35 = vld [vmem:[%s4810_s3 + $0x228] sm:$0xff]  ;;  %v3511_v39 = vpack.c.bf16 %v2079_v37, %v2078_v21 }
 0x223   :  { %3456 = vmatprep.subr.bf16.mxu1 %v3672_v3  ;;  %v3508_v36 = vpack.c.bf16 %v2077_v35, %v2076_v34 }
 0x226   :  { %3458 = vmatpush3.bf16.msra.mxu1 %v3457_v38  ;;  %v1996_v38 = vld [vmem:[#allocation2 + $0x20] sm:$0x3] }
 0x227   :  { %3459 = vmatprep.subr.bf16.mxu1 %v3672_v3 }
 0x229   :  { %3123 = vmatmul.mubr.msk.f32.vlgmr.msra.gmra.mrb[22].mxu1 %vm726_vm2, %v1364_v44  ;;  %v2158_v44 = vld [vmem:[%s4810_s3 + $0x258] sm:$0xff] }
 0x22a   :  { %3461 = vmatpush3.bf16.msra.mxu1 %v3460_v41  ;;  %3133 = vmatprep.mubr.msk.f32.mxu1 %vm3673_vm1, %v3674_v11  ;;  %v2156_v41 = vld [vmem:[%s4810_s3 + $0x248] sm:$0xff]  ;;  %v3517_v46 = vpack.c.bf16 %v2158_v44, %v2157_v43 }
 0x22b   :  { %3462 = vmatprep.subr.bf16.mxu1 %v3672_v3  ;;  %v3514_v42 = vpack.c.bf16 %v2156_v41, %v2155_v40 }
 0x22e   :  { %3464 = vmatpush3.bf16.msra.mxu1 %v3463_v45  ;;  %v2075_v45 = vld [vmem:[#allocation2 + $0x22] sm:$0x3] }
 0x22f   :  { %3465 = vmatprep.subr.bf16.mxu1 %v3672_v3 }
 0x231   :  { %3134 = vmatmul.mubr.msk.f32.vlgmr.msra.gmra.mrb[24].mxu1 %vm726_vm2, %v1443_v51  ;;  %v2237_v51 = vld [vmem:[%s4810_s3 + $0x278] sm:$0xff] }
 0x232   :  { %3467 = vmatpush3.bf16.msra.mxu1 %v3466_v48  ;;  %3144 = vmatprep.mubr.msk.f32.mxu1 %vm3673_vm1, %v3674_v11  ;;  %v2235_v48 = vld [vmem:[%s4810_s3 + $0x268] sm:$0xff]  ;;  %v3523_v53 = vpack.c.bf16 %v2237_v51, %v2236_v50 }
 0x233   :  { %3468 = vmatprep.subr.bf16.mxu1 %v3672_v3  ;;  %v3520_v49 = vpack.c.bf16 %v2235_v48, %v2234_v47  ;;  %v2717_v48 = vld [vmem:[%s4812_s5 + $0x10] sm:$0xff] }
 0x236   :  { %3470 = vmatpush3.bf16.msra.mxu1 %v3469_v52  ;;  %v2154_v52 = vld [vmem:[#allocation2 + $0x24] sm:$0x3] }
 0x237   :  { %3471 = vmatprep.subr.bf16.mxu1 %v3672_v3 }
 0x239   :  { %3145 = vmatmul.mubr.msk.f32.vlgmr.msra.gmra.mrb[26].mxu1 %vm726_vm2, %v1522_v58  ;;  %v2316_v58 = vld [vmem:[%s4810_s3 + $0x298] sm:$0xff] }
 0x23a   :  { %3473 = vmatpush3.bf16.msra.mxu1 %v3472_v55  ;;  %3155 = vmatprep.mubr.msk.f32.mxu1 %vm3673_vm1, %v3674_v11  ;;  %v2314_v55 = vld [vmem:[%s4810_s3 + $0x288] sm:$0xff]  ;;  %v3529_v60 = vpack.c.bf16 %v2316_v58, %v2315_v57  ;;  %v2721_v57 = vld [vmem:[%s4812_s5 + $0x30] sm:$0xff]  ;;  %v2722_v58 = vld [vmem:[%s4812_s5 + $0x38] sm:$0xff] }
 0x23b   :  { %3474 = vmatprep.subr.bf16.mxu1 %v3672_v3  ;;  %v3526_v56 = vpack.c.bf16 %v2314_v55, %v2313_v54  ;;  %v2719_v54 = vld [vmem:[%s4812_s5 + $0x20] sm:$0xff]  ;;  %v2720_v55 = vld [vmem:[%s4812_s5 + $0x28] sm:$0xff] }
 0x23e   :  { %3476 = vmatpush3.bf16.msra.mxu1 %v3475_v59  ;;  %v2233_v59 = vld [vmem:[#allocation2 + $0x26] sm:$0x3] }
 0x23f   :  { %3477 = vmatprep.subr.bf16.mxu1 %v3672_v3 }
 0x241   :  { %3156 = vmatmul.mubr.msk.f32.vlgmr.msra.gmra.mrb[28].mxu1 %vm726_vm2, %v1601_v1  ;;  %v2395_v1 = vld [vmem:[%s4810_s3 + $0x2b8] sm:$0xff] }
 0x242   :  { %3479 = vmatpush3.bf16.msra.mxu1 %v3478_v62  ;;  %3166 = vmatprep.mubr.msk.f32.mxu1 %vm3673_vm1, %v3674_v11  ;;  %v2393_v62 = vld [vmem:[%s4810_s3 + $0x2a8] sm:$0xff]  ;;  %v3535_v4 = vpack.c.bf16 %v2395_v1, %v2394_v0 }
 0x243   :  { %3480 = vmatprep.subr.bf16.mxu1 %v3672_v3  ;;  %v3532_v63 = vpack.c.bf16 %v2393_v62, %v2392_v61  ;;  %v2724_v0 = vld [vmem:[%s4812_s5 + $0x48] sm:$0xff] }
 0x246   :  { %3482 = vmatpush3.bf16.msra.mxu1 %v3481_v2  ;;  %v2312_v2 = vld [vmem:[#allocation2 + $0x28] sm:$0x3] }
 0x247   :  { %3483 = vmatprep.subr.bf16.mxu1 %v3672_v3 }
 0x249   :  { %3167 = vmatmul.mubr.msk.f32.vlgmr.msra.gmra.mrb[30].mxu1 %vm726_vm2, %v1680_v9  ;;  %v2474_v9 = vld [vmem:[%s4810_s3 + $0x2d8] sm:$0xff] }
 0x24a   :  { %3485 = vmatpush3.bf16.msra.mxu1 %v3484_v6  ;;  %3177 = vmatprep.mubr.msk.f32.mxu1 %vm3673_vm1, %v3674_v11  ;;  %v2472_v6 = vld [vmem:[%s4810_s3 + $0x2c8] sm:$0xff]  ;;  %v3541_v12 = vpack.c.bf16 %v2474_v9, %v2473_v8  ;;  %v2727_v9 = vld [vmem:[%s4812_s5 + $0x60] sm:$0xf] }
 0x24b   :  { %3486 = vmatprep.subr.bf16.mxu1 %v3672_v3  ;;  %v3538_v7 = vpack.c.bf16 %v2472_v6, %v2471_v5 }
 0x24e   :  { %3488 = vmatpush3.bf16.msra.mxu1 %v3487_v10  ;;  %v2391_v10 = vld [vmem:[#allocation2 + $0x2a] sm:$0x3] }
 0x24f   :  { %3489 = vmatprep.subr.bf16.mxu1 %v3672_v3 }
 0x251   :  { %3178 = vmatmul.mubr.msk.f32.vlgmr.msra.gmra.mrb[32].mxu1 %vm726_vm2, %v1759_v20  ;;  %v2553_v20 = vld [vmem:[%s4810_s3 + $0x2f8] sm:$0xff] }
 0x252   :  { %3491 = vmatpush3.bf16.msra.mxu1 %v3490_v15  ;;  %3188 = vmatprep.mubr.msk.f32.mxu1 %vm3673_vm1, %v3674_v11  ;;  %v2551_v15 = vld [vmem:[%s4810_s3 + $0x2e8] sm:$0xff]  ;;  %v3547_v24 = vpack.c.bf16 %v2553_v20, %v2552_v19 }
 0x253   :  { %3492 = vmatprep.subr.bf16.mxu1 %v3672_v3  ;;  %v3544_v16 = vpack.c.bf16 %v2551_v15, %v2550_v13 }
 0x256   :  { %3494 = vmatpush3.bf16.msra.mxu1 %v3493_v23  ;;  %v2470_v23 = vld [vmem:[#allocation2 + $0x2c] sm:$0x3] }
 0x257   :  { %3495 = vmatprep.subr.bf16.mxu1 %v3672_v3 }
 0x259   :  { %3189 = vmatmul.mubr.msk.f32.vlgmr.msra.gmra.mrb[34].mxu1 %vm726_vm2, %v1838_v14  ;;  %v2632_v14 = vld [vmem:[%s4810_s3 + $0x318] sm:$0xff] }
 0x25a   :  { %3497 = vmatpush3.bf16.msra.mxu1 %v3496_v26  ;;  %3199 = vmatprep.mubr.msk.f32.mxu1 %vm3673_vm1, %v3674_v11  ;;  %v2630_v26 = vld [vmem:[%s4810_s3 + $0x308] sm:$0xff]  ;;  %v3553_v22 = vpack.c.bf16 %v2632_v14, %v2631_v28 }
 0x25b   :  { %3498 = vmatprep.subr.bf16.mxu1 %v3672_v3  ;;  %v3550_v18 = vpack.c.bf16 %v2630_v26, %v2629_v25 }
 0x25e   :  { %3500 = vmatpush3.bf16.msra.mxu1 %v3499_v29  ;;  %v2549_v29 = vld [vmem:[#allocation2 + $0x2e] sm:$0x3] }
 0x25f   :  { %3501 = vmatprep.subr.bf16.mxu1 %v3672_v3 }
 0x261   :  { %3200 = vmatmul.mubr.msk.f32.vlgmr.msra.gmra.mrb[36].mxu1 %vm726_vm2, %v1917_v32 }
 0x262   :  { %3503 = vmatpush3.bf16.msra.mxu1 %v3502_v27  ;;  %3210 = vmatprep.mubr.msk.f32.mxu1 %vm3673_vm1, %v3674_v11 }
 0x263   :  { %3504 = vmatprep.subr.bf16.mxu1 %v3672_v3 }
 0x266   :  { %3506 = vmatpush3.bf16.msra.mxu1 %v3505_v33 }
 0x267   :  { %3507 = vmatprep.subr.bf16.mxu1 %v3672_v3 }
 0x269   :  { %3211 = vmatmul.mubr.msk.f32.vlgmr.msra.gmra.mrb[38].mxu1 %vm726_vm2, %v1996_v38 }
 0x26a   :  { %3509 = vmatpush3.bf16.msra.mxu1 %v3508_v36  ;;  %3221 = vmatprep.mubr.msk.f32.mxu1 %vm3673_vm1, %v3674_v11 }
 0x26b   :  { %3510 = vmatprep.subr.bf16.mxu1 %v3672_v3 }
 0x26e   :  { %3512 = vmatpush3.bf16.msra.mxu1 %v3511_v39 }
 0x26f   :  { %3513 = vmatprep.subr.bf16.mxu1 %v3672_v3 }
 0x271   :  { %3222 = vmatmul.mubr.msk.f32.vlgmr.msra.gmra.mrb[40].mxu1 %vm726_vm2, %v2075_v45  ;;  %v2715_v45 = vld [vmem:[%s4812_s5] sm:$0xff] }
 0x272   :  { %3515 = vmatpush3.bf16.msra.mxu1 %v3514_v42  ;;  %3232 = vmatprep.mubr.msk.f32.mxu1 %vm3673_vm1, %v3674_v11 }
 0x273   :  { %3516 = vmatprep.subr.bf16.mxu1 %v3672_v3 }
 0x276   :  { %3518 = vmatpush3.bf16.msra.mxu1 %v3517_v46  ;;  %v2716_v46 = vld [vmem:[%s4812_s5 + $0x8] sm:$0xff] }
 0x277   :  { %3519 = vmatprep.subr.bf16.mxu1 %v3672_v3  ;;  %v3556_v47 = vpack.c.bf16 %v2716_v46, %v2715_v45 }
 0x279   :  { %3233 = vmatmul.mubr.msk.f32.vlgmr.msra.gmra.mrb[42].mxu1 %vm726_vm2, %v2154_v52 }
 0x27a   :  { %3521 = vmatpush3.bf16.msra.mxu1 %v3520_v49  ;;  %3243 = vmatprep.mubr.msk.f32.mxu1 %vm3673_vm1, %v3674_v11  ;;  %v2718_v49 = vld [vmem:[%s4812_s5 + $0x18] sm:$0xff] }
 0x27b   :  { %3522 = vmatprep.subr.bf16.mxu1 %v3672_v3  ;;  %v3559_v50 = vpack.c.bf16 %v2718_v49, %v2717_v48 }
 0x27e   :  { %3524 = vmatpush3.bf16.msra.mxu1 %v3523_v53 }
 0x27f   :  { %3525 = vmatprep.subr.bf16.mxu1 %v3672_v3 }
 0x281   :  { %3244 = vmatmul.mubr.msk.f32.vlgmr.msra.gmra.mrb[44].mxu1 %vm726_vm2, %v2233_v59  ;;  %v3565_v59 = vpack.c.bf16 %v2722_v58, %v2721_v57 }
 0x282   :  { %3527 = vmatpush3.bf16.msra.mxu1 %v3526_v56  ;;  %3254 = vmatprep.mubr.msk.f32.mxu1 %vm3673_vm1, %v3674_v11  ;;  %v3562_v56 = vpack.c.bf16 %v2720_v55, %v2719_v54  ;;  %v2883_v55 = vld [vmem:[%s4811_s4] ss:$0 sm:$0xff] }
 0x283   :  { %3528 = vmatprep.subr.bf16.mxu1 %v3672_v3 }
 0x286   :  { %3530 = vmatpush3.bf16.msra.mxu1 %v3529_v60 }
 0x287   :  { %3531 = vmatprep.subr.bf16.mxu1 %v3672_v3 }
 0x289   :  { %3255 = vmatmul.mubr.msk.f32.vlgmr.msra.gmra.mrb[46].mxu1 %vm726_vm2, %v2312_v2  ;;  %v2725_v2 = vld [vmem:[%s4812_s5 + $0x50] sm:$0xff] }
 0x28a   :  { %3533 = vmatpush3.bf16.msra.mxu1 %v3532_v63  ;;  %3265 = vmatprep.mubr.msk.f32.mxu1 %vm3673_vm1, %v3674_v11  ;;  %v2723_v63 = vld [vmem:[%s4812_s5 + $0x40] sm:$0xff] }
 0x28b   :  { %3534 = vmatprep.subr.bf16.mxu1 %v3672_v3  ;;  %v3568_v1 = vpack.c.bf16 %v2724_v0, %v2723_v63 }
 0x28e   :  { %3536 = vmatpush3.bf16.msra.mxu1 %v3535_v4  ;;  %v2726_v4 = vld [vmem:[%s4812_s5 + $0x58] sm:$0xff] }
 0x28f   :  { %3537 = vmatprep.subr.bf16.mxu1 %v3672_v3  ;;  %v3571_v5 = vpack.c.bf16 %v2726_v4, %v2725_v2 }
 0x291   :  { %3266 = vmatmul.mubr.msk.f32.vlgmr.msra.gmra.mrb[48].mxu1 %vm726_vm2, %v2391_v10 }
 0x292   :  { %3539 = vmatpush3.bf16.msra.mxu1 %v3538_v7  ;;  %3276 = vmatprep.mubr.msk.f32.mxu1 %vm3673_vm1, %v3674_v11 }
 0x293   :  { %3540 = vmatprep.subr.bf16.mxu1 %v3672_v3 }
 0x296   :  { %3542 = vmatpush3.bf16.msra.mxu1 %v3541_v12 }
 0x297   :  { %3543 = vmatprep.subr.bf16.mxu1 %v3672_v3 }
 0x299   :  { %3277 = vmatmul.mubr.msk.f32.vlgmr.msra.gmra.mrb[50].mxu1 %vm726_vm2, %v2470_v23 }
 0x29a   :  { %3545 = vmatpush3.bf16.msra.mxu1 %v3544_v16  ;;  %3287 = vmatprep.mubr.msk.f32.mxu1 %vm3673_vm1, %v3674_v11 }
 0x29b   :  { %3546 = vmatprep.subr.bf16.mxu1 %v3672_v3 }
 0x29e   :  { %3548 = vmatpush3.bf16.msra.mxu1 %v3547_v24 }
 0x29f   :  { %3549 = vmatprep.subr.bf16.mxu1 %v3672_v3 }
 0x2a1   :  { %3288 = vmatmul.mubr.msk.f32.vlgmr.msra.gmra.mrb[52].mxu1 %vm726_vm2, %v2549_v29 }
 0x2a2   :  { %3551 = vmatpush3.bf16.msra.mxu1 %v3550_v18  ;;  %3298 = vmatprep.mubr.msk.f32.mxu1 %vm3673_vm1, %v3674_v11 }
 0x2a3   :  { %3552 = vmatprep.subr.bf16.mxu1 %v3672_v3 }
 0x2a6   :  { %3554 = vmatpush3.bf16.msra.mxu1 %v3553_v22 }
 0x2a7   :  { %3555 = vmatprep.subr.bf16.mxu1 %v3672_v3 }
 0x2a9   :  { %3299 = vmatmul.mubr.msk.f32.vlgmr.msra.gmra.mrb[54].mxu1 %vm726_vm2, %v2628_v30 }
 0x2aa   :  { %3327 = vmatprep.mubr.msk.f32.mxu1 %vm3673_vm1, %v3674_v11  ;;  %3557 = vmatpush3.bf16.msra.mxu1 %v3556_v47 }
 0x2ab   :  { %3558 = vmatprep.subr.bf16.mxu1 %v3672_v3 }
 0x2ae   :  { %3560 = vmatpush3.bf16.msra.mxu1 %v3559_v50 }
 0x2af   :  { %3561 = vmatprep.subr.bf16.mxu1 %v3672_v3 }
 0x2b2   :  { %3563 = vmatpush3.bf16.msra.mxu1 %v3562_v56 }
 0x2b3   :  { %3564 = vmatprep.subr.bf16.mxu1 %v3672_v3 }
 0x2b6   :  { %3566 = vmatpush3.bf16.msra.mxu1 %v3565_v59  ;;  %v2884_v59 = vld [vmem:[%s4813_s6] ss:$0 sm:$0xff] }
 0x2b7   :  { %3567 = vmatprep.subr.bf16.mxu1 %v3672_v3 }
 0x2ba   :  { %3569 = vmatpush3.bf16.msra.mxu1 %v3568_v1 }
 0x2bb   :  { %3570 = vmatprep.subr.bf16.mxu1 %v3672_v3 }
 0x2bc   :  { %v813_v27 = vpop.f32.mrb[6].mxu1 }
 0x2bd   :  { %v3036_v31 = vpop.f32.mrb[7].mxu1 }
 0x2be   :  { %3572 = vmatpush3.bf16.msra.mxu1 %v3571_v5 }
 0x2bf   :  { %3325 = vmatprep.subr.mxu1 %v3674_v11 }
 0x2c2   :  { %3326 = vmatpush3.msk.msra.mxu1 %vm2739_vm3, %v2727_v9 }
 0x2c4   :  { %v886_v17 = vpop.f32.mrb[8].mxu1 }
 0x2c5   :  { %v887_v32 = vadd.f32 %v886_v17, %v813_v27  ;;  %v3047_v33 = vpop.f32.mrb[9].mxu1 }
 0x2cc   :  { %v964_v34 = vpop.f32.mrb[10].mxu1 }
 0x2cd   :  { %v968_v35 = vadd.f32 %v964_v34, %v887_v32  ;;  %v3058_v36 = vpop.f32.mrb[11].mxu1 }
 0x2d4   :  { %v1043_v21 = vpop.f32.mrb[12].mxu1 }
 0x2d5   :  { %v1047_v37 = vadd.f32 %v1043_v21, %v968_v35  ;;  %v3069_v38 = vpop.f32.mrb[13].mxu1 }
 0x2dc   :  { %v1122_v39 = vpop.f32.mrb[14].mxu1 }
 0x2dd   :  { %v1126_v40 = vadd.f32 %v1122_v39, %v1047_v37  ;;  %v3080_v41 = vpop.f32.mrb[15].mxu1 }
 0x2e4   :  { %v1201_v42 = vpop.f32.mrb[16].mxu1 }
 0x2e5   :  { %v1205_v43 = vadd.f32 %v1201_v42, %v1126_v40  ;;  %v3091_v44 = vpop.f32.mrb[17].mxu1 }
 0x2ec   :  { %v1280_v51 = vpop.f32.mrb[18].mxu1 }
 0x2ed   :  { %v1284_v52 = vadd.f32 %v1280_v51, %v1205_v43  ;;  %v3102_v53 = vpop.f32.mrb[19].mxu1 }
 0x2f4   :  { %v1359_v60 = vpop.f32.mrb[20].mxu1 }
 0x2f5   :  { %v1363_v61 = vadd.f32 %v1359_v60, %v1284_v52  ;;  %v3113_v62 = vpop.f32.mrb[21].mxu1 }
 0x2fc   :  { %v1438_v6 = vpop.f32.mrb[22].mxu1 }
 0x2fd   :  { %v1442_v7 = vadd.f32 %v1438_v6, %v1363_v61  ;;  %v3124_v8 = vpop.f32.mrb[23].mxu1 }
 0x304   :  { %v1517_v3 = vpop.f32.mrb[24].mxu1 }
 0x305   :  { %v1521_v10 = vadd.f32 %v1517_v3, %v1442_v7  ;;  %v3135_v12 = vpop.f32.mrb[25].mxu1 }
 0x30c   :  { %v1596_v13 = vpop.f32.mrb[26].mxu1 }
 0x30d   :  { %v1600_v15 = vadd.f32 %v1596_v13, %v1521_v10  ;;  %v3146_v16 = vpop.f32.mrb[27].mxu1 }
 0x314   :  { %v1675_v19 = vpop.f32.mrb[28].mxu1 }
 0x315   :  { %v1679_v20 = vadd.f32 %v1675_v19, %v1600_v15  ;;  %v3157_v23 = vpop.f32.mrb[29].mxu1 }
 0x31c   :  { %v1754_v24 = vpop.f32.mrb[30].mxu1 }
 0x31d   :  { %v1758_v25 = vadd.f32 %v1754_v24, %v1679_v20  ;;  %v3168_v26 = vpop.f32.mrb[31].mxu1 }
 0x324   :  { %v1833_v18 = vpop.f32.mrb[32].mxu1 }
 0x325   :  { %v1837_v11 = vadd.f32 %v1833_v18, %v1758_v25  ;;  %v3179_v28 = vpop.f32.mrb[33].mxu1 }
 0x32c   :  { %v1912_v14 = vpop.f32.mrb[34].mxu1 }
 0x32d   :  { %v1916_v29 = vadd.f32 %v1912_v14, %v1837_v11  ;;  %v3190_v22 = vpop.f32.mrb[35].mxu1 }
 0x334   :  { %v1991_v30 = vpop.f32.mrb[36].mxu1 }
 0x335   :  { %v1995_v27 = vadd.f32 %v1991_v30, %v1916_v29  ;;  %v3201_v31 = vpop.f32.mrb[37].mxu1 }
 0x33c   :  { %v2070_v17 = vpop.f32.mrb[38].mxu1 }
 0x33d   :  { %v2074_v32 = vadd.f32 %v2070_v17, %v1995_v27  ;;  %v3212_v33 = vpop.f32.mrb[39].mxu1 }
 0x344   :  { %v2149_v34 = vpop.f32.mrb[40].mxu1 }
 0x345   :  { %v2153_v35 = vadd.f32 %v2149_v34, %v2074_v32  ;;  %v3223_v36 = vpop.f32.mrb[41].mxu1 }
 0x34c   :  { %v2228_v21 = vpop.f32.mrb[42].mxu1 }
 0x34d   :  { %v2232_v37 = vadd.f32 %v2228_v21, %v2153_v35  ;;  %v3234_v38 = vpop.f32.mrb[43].mxu1 }
 0x354   :  { %v2307_v39 = vpop.f32.mrb[44].mxu1 }
 0x355   :  { %v2311_v40 = vadd.f32 %v2307_v39, %v2232_v37  ;;  %v3245_v41 = vpop.f32.mrb[45].mxu1 }
 0x35c   :  { %v2386_v42 = vpop.f32.mrb[46].mxu1 }
 0x35d   :  { %v2390_v43 = vadd.f32 %v2386_v42, %v2311_v40  ;;  %v3256_v44 = vpop.f32.mrb[47].mxu1 }
 0x364   :  { %v2465_v45 = vpop.f32.mrb[48].mxu1 }
 0x365   :  { %v2469_v46 = vadd.f32 %v2465_v45, %v2390_v43  ;;  %v3267_v47 = vpop.f32.mrb[49].mxu1 }
 0x36c   :  { %v2544_v48 = vpop.f32.mrb[50].mxu1 }
 0x36d   :  { %v2548_v49 = vadd.f32 %v2544_v48, %v2469_v46  ;;  %v3278_v50 = vpop.f32.mrb[51].mxu1 }
 0x374   :  { %v2623_v51 = vpop.f32.mrb[52].mxu1 }
 0x375   :  { %v2627_v52 = vadd.f32 %v2623_v51, %v2548_v49  ;;  %v3289_v53 = vpop.f32.mrb[53].mxu1 }
 0x37c   :  { %v2702_v54 = vpop.f32.mrb[54].mxu1 }
 0x37d   :  { %v2706_v56 = vadd.f32 %v2702_v54, %v2627_v52  ;;  %v3300_v57 = vpop.f32.mrb[55].mxu1 }
 0x37f   :  { %v2714_v58 = vadd.f32 %v2883_v55, %v2706_v56 }
 0x381   :  { %3328 = vmatmul.mubr.msk.f32.vlgmr.msra.gmra.mrb[56].mxu1 %vm2735_vm4, %v2714_v58 }
 0x454   :  { %v2809_v60 = vpop.f32.mrb[56].mxu1 }
 0x455   :  { %v2810_v61 = vadd.f32 %v2884_v59, %v2809_v60  ;;  %v3329_v62 = vpop.f32.mrb[57].mxu1 }
 0x457   :  { %2814 = vst.msk [vmem:[#allocation3] sm:$0x3] %vm2813_vm5, %v2810_v61 }
 0x458   :  { %3659 = shalt.err (!%p3656_p4)
}
 0x459   :  { %s3660_s16 = scalar_lea.hbm %s4814_s7, 32 }
 0x45a   :  { %p3661_p5 = scmp.ne.s32.totalorder %s4814_s7, %s3660_s16  ;;  %p3664_p6 = scmp.lt.u32.totalorder %s3660_s16, %s4814_s7 }
 0x45c   :  { %p3666_p7 = pnand %p3664_p6, %p3661_p5 }
 0x45e   :  { %3669 = shalt.err (!%p3666_p7)
}
 0x45f   :  { %2824 = dma.vmem_to_hbm [thread:$0]  %s2822_s13, 32, %s4814_s7, [#allocation4]  }
 0x460   :  { %3670 = dma.done.wait [#allocation4], 32  }
 0x461   :  { %3671 = vsyncadd [#allocation4], 4294967264 }
 0x462   :  { %2828 = vsyncpa [#allocation4], 1 }

</bundles_post_ra>
